<compile_context>
chip_gen: v7x
topology: tpu7x:2x2x1
jax: 0.10.0
libtpu: 0.0.40
codegen_flags: <defaults>
</compile_context>

<pallas_src>
import functools

import numpy as np
import jax
import jax.numpy as jnp
from jax.experimental import pallas as pl
from jax.experimental.pallas import tpu as pltpu


# ---------------------------------------------------------------------------
# Fused kernel: one block of TB texts per grid step
# ---------------------------------------------------------------------------
def _fused_article_kernel(tok_ref, mask_ref, w_enc_ref, b_enc_ref,
                          w_q_ref, w_k_ref, b_q_ref, b_k_ref, out_ref,
                          *, TB, N, L):
    # tok_ref : (TB*N*L, H) bf16  token embeddings of TB texts (text-major rows)
    # mask_ref: (1, 1, TB*N*L) f32 token attention mask, same row order
    # w_enc   : (H, H) bf16, b_enc: (1, H) f32   synthetic encoder params
    # w_q/w_k : (H, H) f32,  b_q/b_k: (1, H) f32 split qk_proj params (W^T halves)
    # out_ref : (TB, H) f32  pooled text embeddings (lane-dense block)
    TBN = TB * N
    TBNL = TBN * L
    H = out_ref.shape[-1]

    # --- synthetic subtext encoder: tanh(Linear) on all TB*N*L tokens at once
    h = jnp.tanh(
        jnp.dot(tok_ref[...], w_enc_ref[...],
                preferred_element_type=jnp.float32) + b_enc_ref[...])        # (TBNL, H) f32

    # --- masked mean pooling over the L tokens of each subtext, done as one
    #     MXU matmul with a block-diagonal (subtext x token) pooling matrix.
    mflat = mask_ref[0]                                                      # (1, TBNL)
    srow = jax.lax.broadcasted_iota(jnp.int32, (TBN, TBNL), 0)               # subtext id
    tcol = jax.lax.broadcasted_iota(jnp.int32, (TBN, TBNL), 1)               # token id
    belong = ((tcol >= srow * L) & (tcol < (srow + 1) * L)).astype(jnp.float32)
    pool = belong * mflat                                                    # (TBN, TBNL)
    tok_cnt = jnp.sum(pool, axis=-1, keepdims=True)                          # (TBN, 1)
    sub = jnp.dot(pool, h, preferred_element_type=jnp.float32)               # (TBN, H)
    sub = sub / jnp.maximum(tok_cnt, 1e-9)            # torch.clamp(mask.sum(1), 1e-9)

    # --- per-(text, subtext) grouping matrices (text-major row order)
    trow = jax.lax.broadcasted_iota(jnp.int32, (TB, TBN), 0)
    scol = jax.lax.broadcasted_iota(jnp.int32, (TB, TBN), 1)
    g_mat = ((scol >= trow * N) & (scol < (trow + 1) * N)).astype(jnp.float32)    # (TB, TBN)
    srow2 = jax.lax.broadcasted_iota(jnp.int32, (TBN, TB), 0)
    tcol2 = jax.lax.broadcasted_iota(jnp.int32, (TBN, TB), 1)
    g_mat_t = ((srow2 >= tcol2 * N) & (srow2 < (tcol2 + 1) * N)).astype(jnp.float32)  # (TBN, TB)

    # --- F.normalize(p=2, dim=1): L2-normalize each hidden feature across the
    #     N subtexts of its own text.
    normsq = jnp.dot(g_mat, sub * sub, preferred_element_type=jnp.float32)        # (TB, H)
    normsq_rows = jnp.dot(g_mat_t, normsq, preferred_element_type=jnp.float32)    # (TBN, H)
    xn = sub / jnp.maximum(jnp.sqrt(normsq_rows), 1e-12)

    # --- WeightedAverageAttention: two aligned q/k projections, q @ k^T,
    #     key masking, softmax, weighted values, sum over the sequence.
    q = jnp.dot(xn, w_q_ref[...], preferred_element_type=jnp.float32) + b_q_ref[...]
    k = jnp.dot(xn, w_k_ref[...], preferred_element_type=jnp.float32) + b_k_ref[...]
    logits = jnp.einsum('qh,kh->qk', q, k,
                        preferred_element_type=jnp.float32) * (1.0 / float(np.sqrt(H)))

    # same_text[a,b] = 1 iff subtexts a,b belong to the same text;
    # allowed[a,b]   = same_text[a,b] * (subtext b has >= 1 unmasked token)
    same_text = jnp.dot(g_mat_t, g_mat, preferred_element_type=jnp.float32)       # (TBN, TBN)
    irow = jax.lax.broadcasted_iota(jnp.int32, (TBN, TBN), 0)
    icol = jax.lax.broadcasted_iota(jnp.int32, (TBN, TBN), 1)
    eye = (irow == icol).astype(jnp.float32)
    valid = (tok_cnt > 0.0).astype(jnp.float32)                                   # (TBN, 1)
    allowed = jnp.dot(same_text, eye * valid, preferred_element_type=jnp.float32)

    logits = jnp.where(allowed == 0.0, -9e15, logits)    # masked_fill(mask == 0, -9e15)
    logits = jnp.where(same_text == 0.0, -3e38, logits)  # remove cross-text pairs
                                                         # (artifact of batching texts)
    attn = jax.nn.softmax(logits, axis=-1)                                         # f32
    values = jnp.dot(attn, xn, preferred_element_type=jnp.float32)                 # (TBN, H)

    # torch.sum(values, dim=1): sum the N per-subtext value rows of each text
    out_ref[...] = jnp.dot(g_mat, values, preferred_element_type=jnp.float32)      # (TB, H)


# ---------------------------------------------------------------------------
# Forward wrapper
# ---------------------------------------------------------------------------
def custom_model_forward(params, tokenized_input_subtexts, subtexts_attention_masks,
                         *, text_block=8):
    assert tokenized_input_subtexts.ndim == 3
    assert tokenized_input_subtexts.shape == subtexts_attention_masks.shape
    B, N, L = tokenized_input_subtexts.shape
    H = params["embed_table"].shape[-1]

    # Texts per grid step; output block (TB, H) must stay (8,128)-tileable.
    TB = text_block if (B % text_block == 0 and
                        (text_block % 8 == 0 or text_block == B)) else B
    G = B // TB
    TBNL = TB * N * L

    # TODO(synk): embedder_base is an external HuggingFace transformer; it is
    # replaced by a deterministic embedding-lookup + tanh(Linear) stand-in,
    # and the (large-vocab) row gather is left to XLA rather than fused as a
    # manual in-kernel DMA gather.  The gathered token stream is fed in bf16
    # to halve HBM traffic of the dominant input.
    tok = jnp.take(params["embed_table"].astype(jnp.bfloat16),
                   tokenized_input_subtexts.reshape(B * N * L), axis=0)     # (B*N*L, H)

    # Token mask per grid block as a lane-major row (replaces the old
    # (BN, L, 1) f32 stream); subtext-level mask is derived in-kernel.
    mask_row = subtexts_attention_masks.reshape(G, 1, TBNL).astype(jnp.float32)

    # Split qk_proj into aligned q / k halves (weight stored as (H, 2H) = W^T).
    w_q = params["w_qk"][:, :H]
    w_k = params["w_qk"][:, H:]
    b_q = params["b_qk"][:H].reshape(1, H)
    b_k = params["b_qk"][H:].reshape(1, H)

    kernel = functools.partial(_fused_article_kernel, TB=TB, N=N, L=L)
    out = pl.pallas_call(
        kernel,
        out_shape=jax.ShapeDtypeStruct((B, H), jnp.float32),
        grid=(G,),
        in_specs=[
            pl.BlockSpec((TBNL, H), lambda b: (b, 0)),         # token embeddings (bf16)
            pl.BlockSpec((1, 1, TBNL), lambda b: (b, 0, 0)),   # token mask row
            pl.BlockSpec((H, H), lambda b: (0, 0)),            # w_enc (bf16)
            pl.BlockSpec((1, H), lambda b: (0, 0)),            # b_enc
            pl.BlockSpec((H, H), lambda b: (0, 0)),            # w_q
            pl.BlockSpec((H, H), lambda b: (0, 0)),            # w_k
            pl.BlockSpec((1, H), lambda b: (0, 0)),            # b_q
            pl.BlockSpec((1, H), lambda b: (0, 0)),            # b_k
        ],
        out_specs=pl.BlockSpec((TB, H), lambda b: (b, 0)),
        compiler_params=pltpu.CompilerParams(dimension_semantics=("parallel",)),
    )(tok, mask_row,
      params["w_enc"].astype(jnp.bfloat16), params["b_enc"].reshape(1, H),
      w_q, w_k, b_q, b_k)
    # (np.savetxt / sklearn cosine_similarity debug dumps in the original
    #  forward are file-I/O side effects and are intentionally skipped.)
    return out


# ---------------------------------------------------------------------------
# Pure-JAX (f32) reference mirroring the torch module
# ---------------------------------------------------------------------------
def reference_forward(params, ids3, masks3):
    B, N, L = ids3.shape
    H = params["embed_table"].shape[-1]
    tok = jnp.take(params["embed_table"], ids3.reshape(B * N, L), axis=0)   # (BN, L, H)
    h = jnp.tanh(jnp.einsum("slh,hk->slk", tok, params["w_enc"]) + params["b_enc"])
    m = masks3.reshape(B * N, L, 1).astype(jnp.float32)
    sub = jnp.sum(h * m, axis=1) / jnp.maximum(jnp.sum(m, axis=1), 1e-9)
    sub = sub.reshape(B, N, H)
    smask = jnp.any(masks3 != 0, axis=-1).astype(jnp.float32)               # (B, N)
    xn = sub / jnp.maximum(jnp.sqrt(jnp.sum(sub * sub, axis=1, keepdims=True)), 1e-12)
    qk = jnp.einsum("bnh,hk->bnk", xn, params["w_qk"]) + params["b_qk"]
    q, k = qk[..., :H], qk[..., H:]
    logits = jnp.einsum("bqh,bkh->bqk", q, k) / np.sqrt(H)
    logits = jnp.where(smask[:, None, :] == 0.0, -9e15, logits)
    attn = jax.nn.softmax(logits, axis=-1)
    vals = jnp.einsum("bqk,bkh->bqh", attn, xn)
    return jnp.sum(vals, axis=1)


if __name__ == "__main__":
    # small but TPU-friendly shapes: 16 texts x 4 subtexts x 16 tokens, H=128
    B, N, L, H, VOCAB = 16, 4, 16, 128, 256

    key = jax.random.PRNGKey(0)
    k_emb, k_wenc, k_benc, k_wqk, k_ids, k_len = jax.random.split(key, 6)

    params = {
        "embed_table": jax.random.normal(k_emb, (VOCAB, H), jnp.float32) * 0.1,
        "w_enc": jax.random.normal(k_wenc, (H, H), jnp.float32) * (1.0 / np.sqrt(H)),
        "b_enc": jax.random.normal(k_benc, (H,), jnp.float32) * 0.01,
        # xavier_uniform-style init for qk_proj (weight stored as (H, 2H) = W^T)
        "w_qk": jax.random.uniform(k_wqk, (H, 2 * H), jnp.float32,
                                   minval=-np.sqrt(6.0 / (3 * H)),
                                   maxval=np.sqrt(6.0 / (3 * H))),
        "b_qk": jnp.zeros((2 * H,), jnp.float32),   # qk_proj.bias.data.fill_(0)
    }

    tokenized_input_subtexts = jax.random.randint(k_ids, (B, N, L), 0, VOCAB, jnp.int32)
    # per-subtext token lengths; a couple of fully-masked subtexts exercise masking
    lengths = jax.random.randint(k_len, (B, N), 1, L + 1, jnp.int32)
    lengths = lengths.at[0, 3].set(0)
    lengths = lengths.at[5, 1].set(0)
    subtexts_attention_masks = (
        jnp.arange(L, dtype=jnp.int32)[None, None, :] < lengths[:, :, None]
    ).astype(jnp.int32)

    out = custom_model_forward(params, tokenized_input_subtexts, subtexts_attention_masks)
    out = jax.block_until_ready(out)

    ref = reference_forward(params, tokenized_input_subtexts, subtexts_attention_masks)
    np.testing.assert_allclose(np.asarray(out), np.asarray(ref), rtol=3e-2, atol=3e-2)

    assert out.shape == (B, H)
    print("KERNEL_OK")
</pallas_src>

<mosaic_0001>
module attributes {stable_mosaic.version = 11 : i64} {
  func.func @_fused_article_kernel(%arg0: i32, %arg1: memref<512x128xbf16, #tpu.memory_space<vmem>>, %arg2: memref<1x1x512xf32, #tpu.memory_space<vmem>>, %arg3: memref<128x128xbf16, #tpu.memory_space<vmem>>, %arg4: memref<1x128xf32, #tpu.memory_space<vmem>>, %arg5: memref<128x128xf32, #tpu.memory_space<vmem>>, %arg6: memref<128x128xf32, #tpu.memory_space<vmem>>, %arg7: memref<1x128xf32, #tpu.memory_space<vmem>>, %arg8: memref<1x128xf32, #tpu.memory_space<vmem>>, %arg9: memref<8x128xf32, #tpu.memory_space<vmem>>) attributes {dimension_semantics = [#tpu.dimension_semantics<parallel>], iteration_bounds = array<i64: 2>, scalar_prefetch = 0 : i64, scratch_operands = 0 : i64, tpu.core_type = #tpu.core_type<tc>, window_params = [{transform_indices = @transform_0, window_bounds = array<i64: 512, 128>}, {transform_indices = @transform_1, window_bounds = array<i64: 1, 1, 512>}, {pipeline_mode = #tpu.pipeline_mode<synchronous>, transform_indices = @transform_2, window_bounds = array<i64: 128, 128>}, {pipeline_mode = #tpu.pipeline_mode<synchronous>, transform_indices = @transform_3, window_bounds = array<i64: 1, 128>}, {pipeline_mode = #tpu.pipeline_mode<synchronous>, transform_indices = @transform_4, window_bounds = array<i64: 128, 128>}, {pipeline_mode = #tpu.pipeline_mode<synchronous>, transform_indices = @transform_5, window_bounds = array<i64: 128, 128>}, {pipeline_mode = #tpu.pipeline_mode<synchronous>, transform_indices = @transform_6, window_bounds = array<i64: 1, 128>}, {pipeline_mode = #tpu.pipeline_mode<synchronous>, transform_indices = @transform_7, window_bounds = array<i64: 1, 128>}, {transform_indices = @transform_8, window_bounds = array<i64: 8, 128>}]} {
    %c0 = arith.constant 0 : index
    %c0_0 = arith.constant 0 : index
    %0 = vector.load %arg1[%c0, %c0_0] : memref<512x128xbf16, #tpu.memory_space<vmem>>, vector<512x128xbf16>
    %c0_1 = arith.constant 0 : index
    %c0_2 = arith.constant 0 : index
    %1 = vector.load %arg3[%c0_1, %c0_2] : memref<128x128xbf16, #tpu.memory_space<vmem>>, vector<128x128xbf16>
    %cst = arith.constant dense<0.000000e+00> : vector<512x128xf32>
    %2 = tpu.matmul %0, %1, %cst {dimension_numbers = #tpu.dot_dimension_numbers<[1], [0], [0], [1], [0, 0, 1, 1], [], []>} : vector<512x128xbf16>, vector<128x128xbf16>, vector<512x128xf32> -> vector<512x128xf32>
    %c0_3 = arith.constant 0 : index
    %c0_4 = arith.constant 0 : index
    %3 = vector.load %arg4[%c0_3, %c0_4] : memref<1x128xf32, #tpu.memory_space<vmem>>, vector<1x128xf32>
    %4 = vector.broadcast %3 : vector<1x128xf32> to vector<512x128xf32>
    %5 = arith.addf %2, %4 : vector<512x128xf32>
    %6 = math.tanh %5 : vector<512x128xf32>
    %c0_5 = arith.constant 0 : index
    %c0_6 = arith.constant 0 : index
    %c0_7 = arith.constant 0 : index
    %7 = vector.load %arg2[%c0_5, %c0_6, %c0_7] : memref<1x1x512xf32, #tpu.memory_space<vmem>>, vector<1x1x512xf32>
    %8 = vector.shape_cast %7 : vector<1x1x512xf32> to vector<1x512xf32>
    %9 = tpu.iota {dimensions = array<i32: 0>} : vector<32x512xi32>
    %10 = tpu.iota {dimensions = array<i32: 1>} : vector<32x512xi32>
    %c16_i32 = arith.constant 16 : i32
    %11 = vector.broadcast %c16_i32 : i32 to vector<32x512xi32>
    %12 = arith.muli %9, %11 : vector<32x512xi32>
    %13 = arith.cmpi sge, %10, %12 : vector<32x512xi32>
    %c1_i32 = arith.constant 1 : i32
    %14 = vector.broadcast %c1_i32 : i32 to vector<32x512xi32>
    %15 = arith.addi %9, %14 : vector<32x512xi32>
    %c16_i32_8 = arith.constant 16 : i32
    %16 = vector.broadcast %c16_i32_8 : i32 to vector<32x512xi32>
    %17 = arith.muli %15, %16 : vector<32x512xi32>
    %18 = arith.cmpi slt, %10, %17 : vector<32x512xi32>
    %19 = arith.andi %13, %18 : vector<32x512xi1>
    %20 = arith.extui %19 : vector<32x512xi1> to vector<32x512xi32>
    %21 = arith.sitofp %20 : vector<32x512xi32> to vector<32x512xf32>
    %22 = vector.broadcast %8 : vector<1x512xf32> to vector<32x512xf32>
    %23 = arith.mulf %21, %22 : vector<32x512xf32>
    %cst_9 = arith.constant dense<0.000000e+00> : vector<32xf32>
    %24 = vector.multi_reduction <add>, %23, %cst_9 [1] : vector<32x512xf32> to vector<32xf32>
    %25 = vector.shape_cast %24 : vector<32xf32> to vector<32x1xf32>
    %cst_10 = arith.constant dense<0.000000e+00> : vector<32x128xf32>
    %26 = tpu.matmul %23, %6, %cst_10 {dimension_numbers = #tpu.dot_dimension_numbers<[1], [0], [0], [1], [0, 0, 1, 1], [], []>} : vector<32x512xf32>, vector<512x128xf32>, vector<32x128xf32> -> vector<32x128xf32>
    %cst_11 = arith.constant 9.99999971E-10 : f32
    %27 = vector.broadcast %cst_11 : f32 to vector<32x1xf32>
    %28 = arith.maximumf %25, %27 : vector<32x1xf32>
    %29 = vector.broadcast %28 : vector<32x1xf32> to vector<32x128xf32>
    %30 = arith.divf %26, %29 : vector<32x128xf32>
    %31 = tpu.iota {dimensions = array<i32: 0>} : vector<8x32xi32>
    %32 = tpu.iota {dimensions = array<i32: 1>} : vector<8x32xi32>
    %c4_i32 = arith.constant 4 : i32
    %33 = vector.broadcast %c4_i32 : i32 to vector<8x32xi32>
    %34 = arith.muli %31, %33 : vector<8x32xi32>
    %35 = arith.cmpi sge, %32, %34 : vector<8x32xi32>
    %c1_i32_12 = arith.constant 1 : i32
    %36 = vector.broadcast %c1_i32_12 : i32 to vector<8x32xi32>
    %37 = arith.addi %31, %36 : vector<8x32xi32>
    %c4_i32_13 = arith.constant 4 : i32
    %38 = vector.broadcast %c4_i32_13 : i32 to vector<8x32xi32>
    %39 = arith.muli %37, %38 : vector<8x32xi32>
    %40 = arith.cmpi slt, %32, %39 : vector<8x32xi32>
    %41 = arith.andi %35, %40 : vector<8x32xi1>
    %42 = arith.extui %41 : vector<8x32xi1> to vector<8x32xi32>
    %43 = arith.sitofp %42 : vector<8x32xi32> to vector<8x32xf32>
    %44 = tpu.iota {dimensions = array<i32: 0>} : vector<32x8xi32>
    %45 = tpu.iota {dimensions = array<i32: 1>} : vector<32x8xi32>
    %c4_i32_14 = arith.constant 4 : i32
    %46 = vector.broadcast %c4_i32_14 : i32 to vector<32x8xi32>
    %47 = arith.muli %45, %46 : vector<32x8xi32>
    %48 = arith.cmpi sge, %44, %47 : vector<32x8xi32>
    %c1_i32_15 = arith.constant 1 : i32
    %49 = vector.broadcast %c1_i32_15 : i32 to vector<32x8xi32>
    %50 = arith.addi %45, %49 : vector<32x8xi32>
    %c4_i32_16 = arith.constant 4 : i32
    %51 = vector.broadcast %c4_i32_16 : i32 to vector<32x8xi32>
    %52 = arith.muli %50, %51 : vector<32x8xi32>
    %53 = arith.cmpi slt, %44, %52 : vector<32x8xi32>
    %54 = arith.andi %48, %53 : vector<32x8xi1>
    %55 = arith.extui %54 : vector<32x8xi1> to vector<32x8xi32>
    %56 = arith.sitofp %55 : vector<32x8xi32> to vector<32x8xf32>
    %57 = arith.mulf %30, %30 : vector<32x128xf32>
    %cst_17 = arith.constant dense<0.000000e+00> : vector<8x128xf32>
    %58 = tpu.matmul %43, %57, %cst_17 {dimension_numbers = #tpu.dot_dimension_numbers<[1], [0], [0], [1], [0, 0, 1, 1], [], []>} : vector<8x32xf32>, vector<32x128xf32>, vector<8x128xf32> -> vector<8x128xf32>
    %cst_18 = arith.constant dense<0.000000e+00> : vector<32x128xf32>
    %59 = tpu.matmul %56, %58, %cst_18 {dimension_numbers = #tpu.dot_dimension_numbers<[1], [0], [0], [1], [0, 0, 1, 1], [], []>} : vector<32x8xf32>, vector<8x128xf32>, vector<32x128xf32> -> vector<32x128xf32>
    %60 = math.sqrt %59 : vector<32x128xf32>
    %cst_19 = arith.constant 9.99999996E-13 : f32
    %61 = vector.broadcast %cst_19 : f32 to vector<32x128xf32>
    %62 = arith.maximumf %60, %61 : vector<32x128xf32>
    %63 = arith.divf %30, %62 : vector<32x128xf32>
    %c0_20 = arith.constant 0 : index
    %c0_21 = arith.constant 0 : index
    %64 = vector.load %arg5[%c0_20, %c0_21] : memref<128x128xf32, #tpu.memory_space<vmem>>, vector<128x128xf32>
    %cst_22 = arith.constant dense<0.000000e+00> : vector<32x128xf32>
    %65 = tpu.matmul %63, %64, %cst_22 {dimension_numbers = #tpu.dot_dimension_numbers<[1], [0], [0], [1], [0, 0, 1, 1], [], []>} : vector<32x128xf32>, vector<128x128xf32>, vector<32x128xf32> -> vector<32x128xf32>
    %c0_23 = arith.constant 0 : index
    %c0_24 = arith.constant 0 : index
    %66 = vector.load %arg7[%c0_23, %c0_24] : memref<1x128xf32, #tpu.memory_space<vmem>>, vector<1x128xf32>
    %67 = vector.broadcast %66 : vector<1x128xf32> to vector<32x128xf32>
    %68 = arith.addf %65, %67 : vector<32x128xf32>
    %c0_25 = arith.constant 0 : index
    %c0_26 = arith.constant 0 : index
    %69 = vector.load %arg6[%c0_25, %c0_26] : memref<128x128xf32, #tpu.memory_space<vmem>>, vector<128x128xf32>
    %cst_27 = arith.constant dense<0.000000e+00> : vector<32x128xf32>
    %70 = tpu.matmul %63, %69, %cst_27 {dimension_numbers = #tpu.dot_dimension_numbers<[1], [0], [0], [1], [0, 0, 1, 1], [], []>} : vector<32x128xf32>, vector<128x128xf32>, vector<32x128xf32> -> vector<32x128xf32>
    %c0_28 = arith.constant 0 : index
    %c0_29 = arith.constant 0 : index
    %71 = vector.load %arg8[%c0_28, %c0_29] : memref<1x128xf32, #tpu.memory_space<vmem>>, vector<1x128xf32>
    %72 = vector.broadcast %71 : vector<1x128xf32> to vector<32x128xf32>
    %73 = arith.addf %70, %72 : vector<32x128xf32>
    "tpu.trace_start"() <{level = 10 : i32, message = "qh,kh->qk"}> : () -> ()
    %cst_30 = arith.constant dense<0.000000e+00> : vector<32x32xf32>
    %74 = tpu.matmul %68, %73, %cst_30 {dimension_numbers = #tpu.dot_dimension_numbers<[1], [1], [0], [0], [0, 0, 1, 0], [], []>} : vector<32x128xf32>, vector<32x128xf32>, vector<32x32xf32> -> vector<32x32xf32>
    "tpu.trace_stop"() : () -> ()
    %cst_31 = arith.constant 0.0883883461 : f32
    %75 = vector.broadcast %cst_31 : f32 to vector<32x32xf32>
    %76 = arith.mulf %74, %75 : vector<32x32xf32>
    %cst_32 = arith.constant dense<0.000000e+00> : vector<32x32xf32>
    %77 = tpu.matmul %56, %43, %cst_32 {dimension_numbers = #tpu.dot_dimension_numbers<[1], [0], [0], [1], [0, 0, 1, 1], [], []>} : vector<32x8xf32>, vector<8x32xf32>, vector<32x32xf32> -> vector<32x32xf32>
    %78 = tpu.iota {dimensions = array<i32: 0>} : vector<32x32xi32>
    %79 = tpu.iota {dimensions = array<i32: 1>} : vector<32x32xi32>
    %80 = arith.cmpi eq, %78, %79 : vector<32x32xi32>
    %81 = arith.extui %80 : vector<32x32xi1> to vector<32x32xi32>
    %82 = arith.sitofp %81 : vector<32x32xi32> to vector<32x32xf32>
    %cst_33 = arith.constant 0.000000e+00 : f32
    %83 = vector.broadcast %cst_33 : f32 to vector<32x1xf32>
    %84 = arith.cmpf ogt, %25, %83 : vector<32x1xf32>
    %85 = arith.extui %84 : vector<32x1xi1> to vector<32x1xi32>
    %86 = arith.sitofp %85 : vector<32x1xi32> to vector<32x1xf32>
    %87 = vector.broadcast %86 : vector<32x1xf32> to vector<32x32xf32>
    %88 = arith.mulf %82, %87 : vector<32x32xf32>
    %cst_34 = arith.constant dense<0.000000e+00> : vector<32x32xf32>
    %89 = tpu.matmul %77, %88, %cst_34 {dimension_numbers = #tpu.dot_dimension_numbers<[1], [0], [0], [1], [0, 0, 1, 1], [], []>} : vector<32x32xf32>, vector<32x32xf32>, vector<32x32xf32> -> vector<32x32xf32>
    %cst_35 = arith.constant 0.000000e+00 : f32
    %90 = vector.broadcast %cst_35 : f32 to vector<32x32xf32>
    %91 = arith.cmpf oeq, %89, %90 : vector<32x32xf32>
    %cst_36 = arith.constant -9.000000e+15 : f32
    %92 = vector.broadcast %cst_36 : f32 to vector<32x32xf32>
    %93 = arith.select %91, %92, %76 : vector<32x32xi1>, vector<32x32xf32>
    %cst_37 = arith.constant 0.000000e+00 : f32
    %94 = vector.broadcast %cst_37 : f32 to vector<32x32xf32>
    %95 = arith.cmpf oeq, %77, %94 : vector<32x32xf32>
    %cst_38 = arith.constant -3.000000e+38 : f32
    %96 = vector.broadcast %cst_38 : f32 to vector<32x32xf32>
    %97 = arith.select %95, %96, %93 : vector<32x32xi1>, vector<32x32xf32>
    %cst_39 = arith.constant dense<0xFF800000> : vector<32xf32>
    %98 = vector.multi_reduction <maximumf>, %97, %cst_39 [1] : vector<32x32xf32> to vector<32xf32>
    %cst_40 = arith.constant 0xFF800000 : f32
    %99 = vector.broadcast %cst_40 : f32 to vector<32xf32>
    %100 = arith.maximumf %99, %98 : vector<32xf32>
    %101 = vector.shape_cast %100 : vector<32xf32> to vector<32x1xf32>
    %102 = vector.broadcast %101 : vector<32x1xf32> to vector<32x32xf32>
    %103 = arith.subf %97, %102 : vector<32x32xf32>
    %104 = math.exp %103 : vector<32x32xf32>
    %cst_41 = arith.constant dense<0.000000e+00> : vector<32xf32>
    %105 = vector.multi_reduction <add>, %104, %cst_41 [1] : vector<32x32xf32> to vector<32xf32>
    %106 = vector.shape_cast %105 : vector<32xf32> to vector<32x1xf32>
    %107 = vector.broadcast %106 : vector<32x1xf32> to vector<32x32xf32>
    %108 = arith.divf %104, %107 : vector<32x32xf32>
    %cst_42 = arith.constant dense<0.000000e+00> : vector<32x128xf32>
    %109 = tpu.matmul %108, %63, %cst_42 {dimension_numbers = #tpu.dot_dimension_numbers<[1], [0], [0], [1], [0, 0, 1, 1], [], []>} : vector<32x32xf32>, vector<32x128xf32>, vector<32x128xf32> -> vector<32x128xf32>
    %cst_43 = arith.constant dense<0.000000e+00> : vector<8x128xf32>
    %110 = tpu.matmul %43, %109, %cst_43 {dimension_numbers = #tpu.dot_dimension_numbers<[1], [0], [0], [1], [0, 0, 1, 1], [], []>} : vector<8x32xf32>, vector<32x128xf32>, vector<8x128xf32> -> vector<8x128xf32>
    %c0_44 = arith.constant 0 : index
    %c0_45 = arith.constant 0 : index
    %111 = vector.load %arg9[%c0_44, %c0_45] : memref<8x128xf32, #tpu.memory_space<vmem>>, vector<8x128xf32>
    tpu.vector_store %arg9[%c0_44, %c0_45], %110 {strides = array<i32>} : memref<8x128xf32, #tpu.memory_space<vmem>>, vector<8x128xf32>,
    return
  }
  func.func @transform_0(%arg0: i32) -> (i32, i32) {
    %c0_i32 = arith.constant 0 : i32
    %c0_i32_0 = arith.constant 0 : i32
    return %arg0, %c0_i32 : i32, i32
  }
  func.func @transform_1(%arg0: i32) -> (i32, i32, i32) {
    %c0_i32 = arith.constant 0 : i32
    %c0_i32_0 = arith.constant 0 : i32
    %c0_i32_1 = arith.constant 0 : i32
    return %arg0, %c0_i32, %c0_i32_0 : i32, i32, i32
  }
  func.func @transform_2(%arg0: i32) -> (i32, i32) {
    %c0_i32 = arith.constant 0 : i32
    %c0_i32_0 = arith.constant 0 : i32
    %c0_i32_1 = arith.constant 0 : i32
    return %c0_i32, %c0_i32_0 : i32, i32
  }
  func.func @transform_3(%arg0: i32) -> (i32, i32) {
    %c0_i32 = arith.constant 0 : i32
    %c0_i32_0 = arith.constant 0 : i32
    %c0_i32_1 = arith.constant 0 : i32
    return %c0_i32, %c0_i32_0 : i32, i32
  }
  func.func @transform_4(%arg0: i32) -> (i32, i32) {
    %c0_i32 = arith.constant 0 : i32
    %c0_i32_0 = arith.constant 0 : i32
    %c0_i32_1 = arith.constant 0 : i32
    return %c0_i32, %c0_i32_0 : i32, i32
  }
  func.func @transform_5(%arg0: i32) -> (i32, i32) {
    %c0_i32 = arith.constant 0 : i32
    %c0_i32_0 = arith.constant 0 : i32
    %c0_i32_1 = arith.constant 0 : i32
    return %c0_i32, %c0_i32_0 : i32, i32
  }
  func.func @transform_6(%arg0: i32) -> (i32, i32) {
    %c0_i32 = arith.constant 0 : i32
    %c0_i32_0 = arith.constant 0 : i32
    %c0_i32_1 = arith.constant 0 : i32
    return %c0_i32, %c0_i32_0 : i32, i32
  }
  func.func @transform_7(%arg0: i32) -> (i32, i32) {
    %c0_i32 = arith.constant 0 : i32
    %c0_i32_0 = arith.constant 0 : i32
    %c0_i32_1 = arith.constant 0 : i32
    return %c0_i32, %c0_i32_0 : i32, i32
  }
  func.func @transform_8(%arg0: i32) -> (i32, i32) {
    %c0_i32 = arith.constant 0 : i32
    %c0_i32_0 = arith.constant 0 : i32
    return %arg0, %c0_i32 : i32, i32
  }
}

</mosaic_0001>

<bundles_post_ra>
// kernel: tpu_custom_call.1
= control target key start
LH: loop header
LB: loop body
LE: loop exit
PB: predicated region body
PF: predicated region fallthrough
CT: control target
= control target key end

     0   :  { %s4913_s0 = inlined_call_operand.hbm [shape: bf16[1024,128], index: 0, kind: input, shape index: {}]   ;;  %s4914_s1 = inlined_call_operand.hbm [shape: f32[2,1,512], index: 1, kind: input, shape index: {}]   ;;  %s4915_s2 = inlined_call_operand.hbm [shape: bf16[128,128], index: 2, kind: input, shape index: {}]   ;;  %s4916_s3 = inlined_call_operand.vmem [shape: f32[1,128], index: 3, kind: input, shape index: {}]   ;;  %s4917_s4 = inlined_call_operand.hbm [shape: f32[128,128], index: 4, kind: input, shape index: {}]   ;;  %s4918_s5 = inlined_call_operand.hbm [shape: f32[128,128], index: 5, kind: input, shape index: {}]   ;;  %s4919_s6 = inlined_call_operand.vmem [shape: f32[1,128], index: 6, kind: input, shape index: {}]   ;;  %s4920_s7 = inlined_call_operand.vmem [shape: f32[1,128], index: 7, kind: input, shape index: {}]   ;;  %s4921_s8 = inlined_call_operand.hbm [shape: f32[16,128], index: 8, kind: output, shape index: {}]  }
   0x1   :  { %4930 = sst [smem:[#allocation19_spill]] %s4913_s0 }
   0x2   :  { %4931 = sst [smem:[#allocation20_spill]] %s4915_s2 }
   0x3   :  { %4932 = sst [smem:[#allocation21_spill]] %s4917_s4 }
   0x4   :  { %4933 = sst [smem:[#allocation22_spill]] %s4918_s5 }
   0x5   :  { %13 = vsyncpa [#allocation3], 0 }
   0x6   :  { %15 = vsyncpa [#allocation3 + $0x1], 0 }
   0x7   :  { %16 = vsyncpa [#allocation6], 0 }
   0x8   :  { %18 = vsyncpa [#allocation6 + $0x1], 0 }
   0x9   :  { %19 = vsyncpa [#allocation9], 0 }
   0xa   :  { %20 = vsyncpa [#allocation4], 0 }
   0xb   :  { %22 = vsyncpa [#allocation4 + $0x1], 0  ;;  %s3862_s27 = smov 0   ;;  %s3864_s28 = smov 0  }
   0xc   :  { %s3866_s29 = smov 0   ;;  %s3868_s30 = smov 0  }
   0xd LB: > { %4934 = sst [smem:[#allocation17_spill]] %s3789_s27  ;;  %s3883_s9 = sadd.s32 4294967295, %s3801_s30   ;;  %s3801_s30 = sphi %s3868_s30, %s4987_s30   ;;  %s3797_s29 = sphi %s3866_s29, %s4986_s29   ;;  %s3793_s28 = sphi %s3864_s28, %s4985_s28   ;;  %s3789_s27 = sphi %s3862_s27, %s4984_s27  }
   0xe   : > { %s2553_s10 = sadd.s32 4294967294, %s3801_s30   ;;  %p48_p0 = scmp.ne.s32.totalorder %s3793_s28, %s3789_s27 }
   0xf   : > { %p4922_p1 = scmp.eq.s32.totalorder %s3883_s9, 0  ;;  %p230_p3 = scmp.eq.s32.totalorder %s2553_s10, 1 }
  0x10   : > { %p2554_p5 = scmp.ge.s32.totalorder %s3801_s30, 1  ;;  %p237_p7 = scmp.lt.s32.totalorder %s3801_s30, 3 }
  0x11   : > { %p3892_p4 = por %p4922_p1, %p48_p0  ;;  %p3897_p6 = por %p230_p3, %p48_p0 }
  0x12   : > { %p3902_p8 = pnand %p2554_p5, %p237_p7  ;;  %s3803_s14 = smov [#allocation7]  }
  0x13   : > { %s4935_s11 = scalar_select %p3892_p4, 1, 0 }
  0x14   : > { %s4936_s12 = scalar_select %p3897_p6, 1, 0 }
  0x15   : > { %s4938_s13 = scalar_select %p3902_p8, 1, 0 }
  0x16   : > { %4937 = sst [smem:[#allocation18_spill]] %s4936_s12  ;;  %s249_s15 = sshll.u32 %s3803_s14, 4  ;;  %s3906_s15 = int_to_ptr.vmem [resolvable:$true] %s249_s15 }
  0x17   : > { %p3299_p9 = pneg %p3902_p8  ;;  %s3804_s17 = smov [#allocation8]  }
  0x18   : > { %s265_s18 = sshll.u32 %s3804_s17, 4  ;;  %s4940_s2 = sld [smem:[#allocation20_spill]]  ;;  %s3917_s18 = int_to_ptr.vmem [resolvable:$true] %s265_s18 }
  0x19   : > { %p3913_p11 = pnand %p3299_p9, %p4922_p1 }
  0x1b   : > { %p3927_p13 = pneg %p3913_p11 }
  0x1e   : > { %s3579_s21 = scalar_lea.hbm %s4940_s2, 1024 }
  0x1f   : > { %p3580_p12 = scmp.ne.s32.totalorder %s4940_s2, %s3579_s21  ;;  %p3586_p5 = scmp.lt.u32.totalorder %s3579_s21, %s4940_s2 }
  0x21   : > { %p3582_p0 = pnand %p3927_p13, %p3580_p12 }
  0x23   : > { %p3583_p3 = pneg %p3582_p0 }
  0x25   : > { %p3588_p7 = pnand %p3586_p5, %p3583_p3 }
  0x27   : > { %3591 = shalt.err (!%p3588_p7)
}
  0x28   : > { %s3592_s10 = scalar_lea.vmem %s3906_s15, 1024  ;;  %p3600_p2 = scmp.lt.s32.totalorder %s3906_s15, %s3906_s15 }
  0x29   : > { %p3593_p9 = scmp.ne.s32.totalorder %s3906_s15, %s3592_s10  ;;  %p3601_p6 = scmp.lt.s32.totalorder %s3592_s10, %s3592_s10 }
  0x2b   : > { %p3595_p10 = pnand %p3593_p9, %p3927_p13  ;;  %p3602_p12 = por %p3601_p6, %p3600_p2 }
  0x2d   : > { %p3596_p1 = pneg %p3595_p10 }
  0x2f   : > { %p3603_p0 = pnand %p3602_p12, %p3596_p1 }
  0x31   : > { %3606 = shalt.err (!%p3603_p0)
}
  0x32   : > { %s4924_s14 = smov 64   ;;  %s4925_s17 = smov 4  }
  0x33   : > { %3302 = dma.hbm_to_vmem [thread:$0]  (!%p3913_p11), %s4940_s2, 1024, %s3906_s15, [#allocation6], %s4924_s14, %s4924_s14, %s4925_s17  }
  0x34   : > { %s4942_s4 = sld [smem:[#allocation21_spill]] }
  0x3a   : > { %s3607_s23 = scalar_lea.hbm %s4942_s4, 2048 }
  0x3b   : > { %p3608_p1 = scmp.ne.s32.totalorder %s4942_s4, %s3607_s23  ;;  %p3614_p10 = scmp.lt.u32.totalorder %s3607_s23, %s4942_s4 }
  0x3d   : > { %p3610_p2 = pnand %p3608_p1, %p3927_p13 }
  0x3f   : > { %p3611_p6 = pneg %p3610_p2 }
  0x41   : > { %p3616_p3 = pnand %p3614_p10, %p3611_p6 }
  0x43   : > { %3619 = shalt.err (!%p3616_p3)
}
  0x44   : > { %s3620_s15 = scalar_lea.vmem %s3917_s18, 2048  ;;  %p3628_p12 = scmp.lt.s32.totalorder %s3917_s18, %s3917_s18 }
  0x45   : > { %p3621_p5 = scmp.ne.s32.totalorder %s3917_s18, %s3620_s15  ;;  %p3629_p0 = scmp.lt.s32.totalorder %s3620_s15, %s3620_s15 }
  0x47   : > { %p3623_p7 = pnand %p3621_p5, %p3927_p13  ;;  %p3630_p1 = por %p3629_p0, %p3628_p12 }
  0x49   : > { %p3624_p9 = pneg %p3623_p7 }
  0x4b   : > { %p3631_p2 = pnand %p3630_p1, %p3624_p9 }
  0x4d   : > { %3634 = shalt.err (!%p3631_p2)
}
  0x4e   : > { %s3807_s19 = smov 128   ;;  %s3808_s12 = smov 8  }
  0x4f   : > { %3305 = dma.hbm_to_vmem [thread:$0]  (!%p3913_p11), %s4942_s4, 2048, %s3917_s18, [#allocation9], %s3807_s19, %s3807_s19, %s3808_s12  }
  0x50   : > { %s3809_s22 = smov [#allocation10]   ;;  %s3975_s25 = sadd.s32 1, %s3801_s30  }
  0x51   : > { %s278_s23 = sshll.u32 %s3809_s22, 4  ;;  %s4943_s5 = sld [smem:[#allocation22_spill]]  ;;  %s279_s23 = int_to_ptr.vmem [resolvable:$true] %s278_s23 }
  0x57   : > { %s3635_s15 = scalar_lea.hbm %s4943_s5, 2048 }
  0x58   : > { %p3636_p6 = scmp.ne.s32.totalorder %s4943_s5, %s3635_s15  ;;  %p3642_p5 = scmp.lt.u32.totalorder %s3635_s15, %s4943_s5 }
  0x5a   : > { %p3638_p10 = pnand %p3636_p6, %p3927_p13 }
  0x5c   : > { %p3639_p3 = pneg %p3638_p10 }
  0x5e   : > { %p3644_p7 = pnand %p3642_p5, %p3639_p3 }
  0x60   : > { %3647 = shalt.err (!%p3644_p7)
}
  0x61   : > { %s3648_s18 = scalar_lea.vmem %s279_s23, 2048  ;;  %p3656_p1 = scmp.lt.s32.totalorder %s279_s23, %s279_s23 }
  0x62   : > { %p3649_p9 = scmp.ne.s32.totalorder %s279_s23, %s3648_s18  ;;  %p3657_p2 = scmp.lt.s32.totalorder %s3648_s18, %s3648_s18 }
  0x64   : > { %p3651_p12 = pnand %p3649_p9, %p3927_p13  ;;  %p3658_p4 = por %p3657_p2, %p3656_p1 }
  0x66   : > { %p3652_p0 = pneg %p3651_p12 }
  0x68   : > { %p3659_p8 = pnand %p3658_p4, %p3652_p0 }
  0x6a   : > { %3662 = shalt.err (!%p3659_p8)
}
  0x6b   : > { %3308 = dma.hbm_to_vmem [thread:$0]  (!%p3913_p11), %s4943_s5, 2048, %s279_s23, [#allocation9], %s3807_s19, %s3807_s19, %s3808_s12  }
  0x6c   : > { %s32_s2 = ssub.s32 %s3801_s30, %s3975_s25  ;;  %s35_s27 = sadd.s32 1, %s3797_s29 }
  0x6d   : > { %p33_p4 = scmp.eq.s32.totalorder %s32_s2, 0  ;;  %p42_p8 = scmp.ne.s32.totalorder %s3797_s29, %s3793_s28 }
  0x6e   : > { %p43_p13 = scmp.eq.s32.totalorder %s3801_s30, 0  ;;  %p3323_p6 = scmp.lt.s32.totalorder %s3801_s30, 2 }
  0x6f   : > { %s4003_s16 = scalar_select %p33_p4, %s3797_s29, %s35_s27  }
  0x70   : > { %p44_p10 = por %p43_p13, %p42_p8  ;;  %p4944_p3 = scmp.eq.s32.totalorder %s3883_s9, 1 }
  0x71   : > { %s4012_s20 = sand.u32 1, %s3797_s29   ;;  %s2667_s19 = sshll.u32 %s3801_s30, 12 }
  0x72   : > { %p4007_p5 = por %p4944_p3, %p42_p8  ;;  %s2559_s12 = sshll.u32 %s4012_s20, 8 }
  0x73   : > { %s4946_s0 = sld [smem:[#allocation19_spill]]  ;;  %s302_s26 = scalar_lea.vmem [#allocation2], %s2559_s12 }
  0x74   : > { %s4945_s24 = scalar_select %p4007_p5, 1, 0 }
  0x75   : > { %s309_s10 = sshll.u32 %s302_s26, 4  ;;  %p4021_p11 = pnand %p3323_p6, %p44_p10  ;;  %s4025_s10 = int_to_ptr.vmem [resolvable:$true] %s309_s10 }
  0x76   : > { %s299_s14 = scalar_lea.sflag [#allocation3], %s4012_s20 }
  0x77   : > { %p3665_p9 = pneg %p4021_p11 }
  0x79   : > { %s4019_s23 = scalar_lea.hbm %s4946_s0, %s2667_s19  ;;  %s3668_s19 = scalar_lea.hbm %s4946_s0, 8192 }
  0x7a   : > { %s3663_s17 = scalar_lea.hbm %s4019_s23, 4096  ;;  %p3669_p1 = scmp.lt.u32.totalorder %s4019_s23, %s4946_s0 }
  0x7b   : > { %p3664_p7 = scmp.ne.s32.totalorder %s4019_s23, %s3663_s17  ;;  %p3670_p2 = scmp.lt.u32.totalorder %s3668_s19, %s3663_s17 }
  0x7c   : > { %p3672_p8 = scmp.lt.u32.totalorder %s3663_s17, %s4019_s23 }
  0x7d   : > { %p3666_p12 = pnand %p3665_p9, %p3664_p7  ;;  %p3671_p4 = por %p3670_p2, %p3669_p1 }
  0x7f   : > { %p3667_p0 = pneg %p3666_p12  ;;  %p3673_p13 = por %p3672_p8, %p3671_p4 }
  0x81   : > { %p3674_p6 = pnand %p3673_p13, %p3667_p0 }
  0x83   : > { %3677 = shalt.err (!%p3674_p6)
}
  0x84   : > { %s3678_s22 = scalar_lea.vmem %s4025_s10, 4096  ;;  %s3810_s26 = smov [#allocation2]  }
  0x85   : > { %p3679_p10 = scmp.ne.s32.totalorder %s4025_s10, %s3678_s22  ;;  %s3683_s2 = sshll.u32 %s3810_s26, 4  ;;  %s3684_s2 = int_to_ptr.vmem [resolvable:$false] %s3683_s2 }
  0x86   : > { %s3685_s27 = scalar_lea.vmem %s3684_s2, 8192  ;;  %p3686_p12 = scmp.lt.s32.totalorder %s4025_s10, %s3684_s2 }
  0x87   : > { %p3681_p3 = pnand %p3679_p10, %p3665_p9  ;;  %p3687_p1 = scmp.lt.s32.totalorder %s3685_s27, %s3678_s22 }
  0x89   : > { %p3682_p7 = pneg %p3681_p3  ;;  %p3688_p2 = por %p3687_p1, %p3686_p12 }
  0x8b   : > { %p3689_p4 = pnand %p3688_p2, %p3682_p7 }
  0x8d   : > { %3692 = shalt.err (!%p3689_p4)
}
  0x8e   : > { %s4948_s17 = smov 4   ;;  %s4949_s19 = smov 64  }
  0x8f   : > { %3312 = dma.hbm_to_vmem [thread:$0]  (!%p4021_p11), %s4019_s23, 4096, %s4025_s10, %s299_s14, %s4949_s19, %s4949_s19, %s4948_s17  }
  0x90   : > { %s2562_s12 = sshll.u32 %s4012_s20, 2  ;;  %s2668_s21 = sshll.u32 %s3801_s30, 6 }
  0x91   : > { %s4064_s2 = scalar_lea.hbm %s4914_s1, %s2668_s21  ;;  %s323_s27 = scalar_lea.vmem [#allocation5], %s2562_s12 }
  0x92   : > { %s331_s18 = sshll.u32 %s323_s27, 4  ;;  %s4950_s0 = sand.u32 1, %s3801_s30   ;;  %s332_s18 = int_to_ptr.vmem [resolvable:$true] %s331_s18 }
  0x93   : > { %s320_s4 = scalar_lea.sflag [#allocation6], %s4950_s0  ;;  %s3693_s5 = scalar_lea.hbm %s4064_s2, 64 }
  0x94   : > { %p3694_p0 = scmp.ne.s32.totalorder %s4064_s2, %s3693_s5  ;;  %s3698_s10 = scalar_lea.hbm %s4914_s1, 128 }
  0x95   : > { %p3699_p6 = scmp.lt.u32.totalorder %s4064_s2, %s4914_s1  ;;  %p3700_p10 = scmp.lt.u32.totalorder %s3698_s10, %s3693_s5 }
  0x96   : > { %p3696_p8 = pnand %p3694_p0, %p3665_p9  ;;  %p3702_p7 = scmp.lt.u32.totalorder %s3693_s5, %s4064_s2 }
  0x97   : > { %p3701_p3 = por %p3700_p10, %p3699_p6 }
  0x98   : > { %p3697_p13 = pneg %p3696_p8 }
  0x99   : > { %p3703_p12 = por %p3702_p7, %p3701_p3 }
  0x9b   : > { %p3704_p1 = pnand %p3703_p12, %p3697_p13 }
  0x9d   : > { %3707 = shalt.err (!%p3704_p1)
}
  0x9e   : > { %s3708_s0 = scalar_lea.vmem %s332_s18, 64  ;;  %s3811_s19 = smov [#allocation5]  }
  0x9f   : > { %p3709_p2 = scmp.ne.s32.totalorder %s332_s18, %s3708_s0  ;;  %s3713_s12 = sshll.u32 %s3811_s19, 4  ;;  %s3714_s12 = int_to_ptr.vmem [resolvable:$false] %s3713_s12 }
  0xa0   : > { %s3715_s21 = scalar_lea.vmem %s3714_s12, 128  ;;  %p3716_p8 = scmp.lt.s32.totalorder %s332_s18, %s3714_s12 }
  0xa1   : > { %p3711_p4 = pnand %p3709_p2, %p3665_p9  ;;  %p3717_p5 = scmp.lt.s32.totalorder %s3715_s21, %s3708_s0 }
  0xa3   : > { %p3712_p0 = pneg %p3711_p4  ;;  %p3718_p6 = por %p3717_p5, %p3716_p8 }
  0xa5   : > { %p3719_p10 = pnand %p3718_p6, %p3712_p0 }
  0xa7   : > { %3722 = shalt.err (!%p3719_p10)
}
  0xa8   : > { %3315 = dma.hbm_to_vmem [thread:$0]  (!%p4021_p11), %s4064_s2, 64, %s332_s18, %s320_s4  }
  0xa9   : > { %p4951_p13 = scmp.ne.s32.totalorder %s4938_s13, 0 }
  0xaa   : > { %s4090_s5 = sand.u32 (!%p4951_p13), 1, %s3793_s28   ;;  %p4952_p5 = scmp.ne.s32.totalorder (!%p4951_p13), %s4935_s11, 0 }
  0xab   : > { %340 = sbr.rel (%p4951_p13) target bundleno = 2521 (0x9d9), region = 52  ;;  %s2566_s22 = sshll.u32 (!%p4951_p13), %s4090_s5, 8 }
  0xac   : > { %s343_s26 = scalar_lea.sflag (!%p4951_p13), [#allocation3], %s4090_s5  ;;  %s4094_s27 = scalar_lea.vmem (!%p4951_p13), [#allocation2], %s2566_s22 }
  0xb2   : > { %3768 = dma.done.wait (%p4952_p5), %s343_s26, 4096  }
  0xb3   : > { %3770 = vsyncadd (%p4952_p5), %s343_s26, 4294963200  ;;  %s351_s4 = sand.u32 1, %s3883_s9   ;;  %s2567_s13 = sshll.u32 %s4090_s5, 2 }
  0xb4   : > { %s352_s15 = scalar_lea.sflag [#allocation6], %s351_s4  ;;  %s4102_s18 = scalar_lea.vmem [#allocation5], %s2567_s13 }
  0xb5   : > { %3772 = dma.done.wait (%p4952_p5), %s352_s15, 64  }
  0xb6   : > { %3774 = vsyncadd (%p4952_p5), %s352_s15, 4294967232  ;;  %p4953_p11 = scmp.eq.s32.totalorder %s3883_s9, 0 }
  0xb8   : > { %3776 = dma.done.wait (%p4953_p11), [#allocation6], 1024   ;;  %p4954_p9 = pmov %p4953_p11 }
  0xba   : > { %3778 = vsyncadd (%p4954_p9), [#allocation6], 4294966272  ;;  %p4955_p3 = pmov %p4954_p9 }
  0xbc   : > { %3780 = dma.done.wait (%p4955_p3), [#allocation9], 4096   ;;  %p4956_p7 = pmov %p4955_p3 }
  0xbd   : > { %v3371_v0 = vld [vmem:[#allocation7] sm:$0xff]   ;;  %v3372_v1 = vld [vmem:[#allocation7 + $0x8] sm:$0xff]   ;;  %v3373_v2 = vld [vmem:[#allocation7 + $0x10] sm:$0xff]   ;;  %v1088_v40 = vlaneseq  ;;  %v3812_v50 = vmov 0.0   ;;  %s2571_s17 = sshll.u32 %s4090_s5, 3  ;;  %s2664_s12 = sshll.u32 %s3883_s9, 7 }
  0xbe   : > { %3782 = vsyncadd (%p4956_p7), [#allocation9], 4294963200  ;;  %2881 = vmatprep.subr.bf16.mxu0 %v3371_v0  ;;  %v3374_v3 = vld [vmem:[#allocation7 + $0x18] sm:$0xff]   ;;  %v3375_v5 = vld [vmem:[#allocation7 + $0x20] sm:$0xff]   ;;  %s404_s0 = scalar_lea.vmem [#allocation11], %s2571_s17  ;;  %s4871_s26 = scalar_lea.hbm %s4921_s8, %s2664_s12 }
  0xbf   : > { %2882 = vmatpush3.bf16.msra.mxu0 %v3371_v0  ;;  %v3379_v4 = vld [vmem:[%s4094_s27] sm:$0xff]   ;;  %v3376_v6 = vld [vmem:[#allocation7 + $0x28] sm:$0xff]   ;;  %v3377_v7 = vld [vmem:[#allocation7 + $0x30] sm:$0xff]   ;;  %v4148_v41 = vshrl.u32 %v1088_v40, 7  ;;  %v4150_v42 = vand.u32 127, %v1088_v40  ;;  %s2432_s19 = sshll.u32 %s404_s0, 4  ;;  %s4866_s19 = int_to_ptr.vmem [resolvable:$true] %s2432_s19 }
  0xc0   : > { %2883 = vmatprep.subr.bf16.mxu0 %v3372_v1  ;;  %2897 = vmatprep.mubr.bf16.mxu0 %v3379_v4  ;;  %v3378_v8 = vld [vmem:[#allocation7 + $0x38] sm:$0xff]   ;;  %v3380_v9 = vld [vmem:[%s4094_s27 + $0x8] sm:$0xff]   ;;  %v3381_v10 = vld [vmem:[%s4094_s27 + $0x10] sm:$0xff]   ;;  %s3723_s4 = scalar_lea.vmem %s4866_s19, 128  ;;  %p4979_p1 = scmp.ne.s32.totalorder %s4945_s24, 0 }
  0xc1   : > { %v3382_v11 = vld [vmem:[%s4094_s27 + $0x18] sm:$0xff]   ;;  %v3383_v12 = vld [vmem:[%s4094_s27 + $0x20] sm:$0xff]   ;;  %v3384_v13 = vld [vmem:[%s4094_s27 + $0x28] sm:$0xff]   ;;  %v4153_v43 = vadd.s32 1, %v4148_v41  ;;  %v4156_v44 = vadd.s32 128, %v4150_v42  ;;  %v4159_v45 = vmul.u32 16, %v4148_v41  ;;  %p3724_p12 = scmp.ne.s32.totalorder %s4866_s19, %s3723_s4 }
  0xc2   : > { %v3385_v14 = vld [vmem:[%s4094_s27 + $0x30] sm:$0xff]   ;;  %v3386_v15 = vld [vmem:[%s4094_s27 + $0x38] sm:$0xff]   ;;  %v3387_v16 = vld [vmem:[%s4094_s27 + $0x40] sm:$0xff]   ;;  %v1197_v47 = vsub.s32 1, %v4148_v41  ;;  %v4181_v53 = vadd.s32 8, %v4148_v41  ;;  %v4190_v56 = vadd.s32 16, %v4148_v41 }
  0xc3   : > { %2884 = vmatpush3.bf16.msra.mxu0 %v3372_v1  ;;  %v3388_v17 = vld [vmem:[%s4094_s27 + $0x48] sm:$0xff]   ;;  %v3389_v18 = vld [vmem:[%s4094_s27 + $0x50] sm:$0xff]   ;;  %v3390_v19 = vld [vmem:[%s4094_s27 + $0x58] sm:$0xff]   ;;  %v4162_v46 = vmul.u32 16, %v4153_v43  ;;  %vm1103_vm0 = vcmp.ge.s32.totalorder %v4156_v44, %v4159_v45  ;;  %vm1102_vm3 = vcmp.ge.s32.totalorder %v4150_v42, %v4159_v45  ;;  %p3725_p2 = pnand %p3724_p12, %p4979_p1  ;;  %s3816_s9 = smov [#allocation11]  }
  0xc4   : > { %2885 = vmatprep.subr.bf16.mxu0 %v3373_v2  ;;  %v3391_v20 = vld [vmem:[%s4094_s27 + $0x60] sm:$0xff]   ;;  %v3392_v21 = vld [vmem:[%s4094_s27 + $0x68] sm:$0xff]   ;;  %v3393_v22 = vld [vmem:[%s4094_s27 + $0x70] sm:$0xff]   ;;  %v1119_v55 = vadd.s32 1, %v4181_v53  ;;  %v1120_v58 = vadd.s32 1, %v4190_v56  ;;  %v4200_v63 = vmul.u32 16, %v4181_v53 }
  0xc5   : > { %v3394_v23 = vld [vmem:[%s4094_s27 + $0x78] sm:$0xff]   ;;  %v3395_v24 = vld [vmem:[%s4094_s27 + $0x80] sm:$0xff]   ;;  %v3396_v25 = vld [vmem:[%s4094_s27 + $0x88] sm:$0xff]   ;;  %vm1127_vm1 = vcmp.lt.s32.totalorder %v4156_v44, %v4162_v46  ;;  %vm1126_vm4 = vcmp.lt.s32.totalorder %v4150_v42, %v4162_v46  ;;  %p3726_p4 = pneg %p3725_p2  ;;  %s3727_s13 = sshll.u32 %s3816_s9, 4  ;;  %s3728_s13 = int_to_ptr.vmem [resolvable:$false] %s3727_s13 }
  0xc6   : > { %v3397_v26 = vld [vmem:[%s4094_s27 + $0x90] sm:$0xff]   ;;  %v3398_v27 = vld [vmem:[%s4094_s27 + $0x98] sm:$0xff]   ;;  %v3399_v28 = vld [vmem:[%s4094_s27 + $0xa0] sm:$0xff]   ;;  %v4202_v0 = vmul.u32 16, %v1119_v55  ;;  %vm1107_vm6 = vcmp.ge.s32.totalorder %v4156_v44, %v4200_v63  ;;  %vm1106_vm8 = vcmp.ge.s32.totalorder %v4150_v42, %v4200_v63  ;;  %s3729_s15 = scalar_lea.vmem %s3728_s13, 256  ;;  %p3730_p0 = scmp.lt.s32.totalorder %s4866_s19, %s3728_s13 }
  0xc7   : > { %2886 = vmatpush3.bf16.msra.mxu0 %v3373_v2  ;;  %v3400_v29 = vld [vmem:[%s4094_s27 + $0xa8] sm:$0xff]   ;;  %v3401_v30 = vld [vmem:[%s4094_s27 + $0xb0] sm:$0xff]   ;;  %v3402_v31 = vld [vmem:[%s4094_s27 + $0xb8] sm:$0xff]   ;;  %p3731_p8 = scmp.lt.s32.totalorder %s3729_s15, %s3723_s4 }
  0xc8   : > { %2887 = vmatprep.subr.bf16.mxu0 %v3374_v3  ;;  %v3403_v32 = vld [vmem:[%s4094_s27 + $0xc0] sm:$0xff]   ;;  %v3404_v33 = vld [vmem:[%s4094_s27 + $0xc8] sm:$0xff]   ;;  %v3405_v34 = vld [vmem:[%s4094_s27 + $0xd0] sm:$0xff]   ;;  %vm1131_vm7 = vcmp.lt.s32.totalorder %v4156_v44, %v4202_v0  ;;  %vm1130_vm9 = vcmp.lt.s32.totalorder %v4150_v42, %v4202_v0 }
  0xc9   : > { %v3406_v35 = vld [vmem:[%s4094_s27 + $0xd8] sm:$0xff]   ;;  %v3407_v36 = vld [vmem:[%s4094_s27 + $0xe0] sm:$0xff]   ;;  %v3408_v37 = vld [vmem:[%s4094_s27 + $0xe8] sm:$0xff]   ;;  %p3732_p6 = por %p3731_p8, %p3730_p0 }
  0xca   : > { %v3409_v38 = vld [vmem:[%s4094_s27 + $0xf0] sm:$0xff]   ;;  %v3410_v39 = vld [vmem:[%s4094_s27 + $0xf8] sm:$0xff]   ;;  %v4166_v48 = vld [vmem:[%s4102_s18] sm:$0xf]  ;;  %s2419_s27 = scalar_lea.sflag [#allocation4], %s4090_s5 }
  0xcb   : > { %2888 = vmatpush3.bf16.msra.mxu0 %v3374_v3  ;;  %vm1143_vm2 = vmand %vm1103_vm0, %vm1127_vm1  ;;  %v4173_v49 = vrot.slane %v4166_v48, %v1197_v47  ;;  %v4186_v54 = vld [vmem:[%s4916_s3] ss:$0 sm:$0xff]  ;;  %v1193_v3 = vsub.s32 0, %v4148_v41  ;;  %v1205_v47 = vsub.s32 3, %v4148_v41  ;;  %p3733_p10 = pnand %p3732_p6, %p3726_p4 }
  0xcc   : > { %2889 = vmatprep.subr.bf16.mxu0 %v3375_v5  ;;  %v2614_v51 = vsel %vm1143_vm2, 1.0, %v3812_v50  ;;  %vm1142_vm5 = vmand %vm1102_vm3, %vm1126_vm4 }
  0xcd   : > { %v4177_v52 = vmul.f32 %v2614_v51, %v4173_v49  ;;  %vm4236_vm12 = vmand %vm1107_vm6, %vm1131_vm7 }
  0xce   : > { %vm4245_vm15 = vmand %vm1106_vm8, %vm1130_vm9 }
  0xcf   : > { %2890 = vmatpush3.bf16.msra.mxu0 %v3375_v5  ;;  %1311 = vmatprep.mubr.f32.mxu1 %v4177_v52  ;;  %v4208_v5 = vmul.u32 16, %v4190_v56 }
  0xd0   : > { %2891 = vmatprep.subr.bf16.mxu0 %v3376_v6 }
  0xd1   : > { %vm1111_vm10 = vcmp.ge.s32.totalorder %v4156_v44, %v4208_v5  ;;  %vm1110_vm13 = vcmp.ge.s32.totalorder %v4150_v42, %v4208_v5 }
  0xd3   : > { %2892 = vmatpush3.bf16.msra.mxu0 %v3376_v6  ;;  %v4210_v6 = vmul.u32 16, %v1120_v58 }
  0xd4   : > { %2893 = vmatprep.subr.bf16.mxu0 %v3377_v7 }
  0xd5   : > { %vm1135_vm11 = vcmp.lt.s32.totalorder %v4156_v44, %v4210_v6  ;;  %vm1134_vm14 = vcmp.lt.s32.totalorder %v4150_v42, %v4210_v6 }
  0xd6   : > { %vm4261_vm0 = vmand %vm1111_vm10, %vm1135_vm11 }
  0xd7   : > { %2894 = vmatpush3.bf16.msra.mxu0 %v3377_v7  ;;  %v4217_v7 = vadd.s32 24, %v4148_v41  ;;  %vm1150_vm2 = vmand %vm1110_vm13, %vm1134_vm14 }
  0xd8   : > { %2895 = vmatprep.subr.bf16.mxu0 %v3378_v8 }
  0xdb   : > { %2896 = vmatpush3.bf16.msra.mxu0 %v3378_v8  ;;  %v2613_v8 = vsel %vm1142_vm5, 1.0, %v3812_v50 }
  0xde   : > { %2898 = vmatmul.mubr.bf16.vlgmr.msra.gmra.mrb[0].mxu0 %v3380_v9  ;;  %v4221_v9 = vrot.slane %v4166_v48, %v1193_v3 }
  0xdf   : > { %2901 = vmatprep.mubr.bf16.mxu0 %v3381_v10 }
  0xe6   : > { %2902 = vmatmul.mubr.bf16.gmra.mrb[4].mxu0 %v3382_v11  ;;  %v4232_v11 = vmul.u32 16, %v4217_v7 }
  0xe7   : > { %2905 = vmatprep.mubr.bf16.mxu0 %v3383_v12  ;;  %v1121_v12 = vadd.s32 1, %v4217_v7 }
  0xe8   : > { %vm1115_vm1 = vcmp.ge.s32.totalorder %v4156_v44, %v4232_v11  ;;  %vm1114_vm5 = vcmp.ge.s32.totalorder %v4150_v42, %v4232_v11 }
  0xee   : > { %2906 = vmatmul.mubr.bf16.gmra.mrb[8].mxu0 %v3384_v13 }
  0xef   : > { %2909 = vmatprep.mubr.bf16.mxu0 %v3385_v14 }
  0xf6   : > { %2910 = vmatmul.mubr.bf16.gmra.mrb[12].mxu0 %v3386_v15 }
  0xf7   : > { %2913 = vmatprep.mubr.bf16.mxu0 %v3387_v16 }
  0xfe   : > { %2914 = vmatmul.mubr.bf16.gmra.mrb[16].mxu0 %v3388_v17 }
  0xff   : > { %2917 = vmatprep.mubr.bf16.mxu0 %v3389_v18 }
 0x106   : > { %2918 = vmatmul.mubr.bf16.gmra.mrb[20].mxu0 %v3390_v19  ;;  %v4249_v19 = vmul.u32 16, %v1121_v12 }
 0x107   : > { %2921 = vmatprep.mubr.bf16.mxu0 %v3391_v20 }
 0x108   : > { %vm1139_vm3 = vcmp.lt.s32.totalorder %v4156_v44, %v4249_v19  ;;  %vm1138_vm6 = vcmp.lt.s32.totalorder %v4150_v42, %v4249_v19 }
 0x109   : > { %vm1155_vm4 = vmand %vm1115_vm1, %vm1139_vm3 }
 0x10a   : > { %v2626_v55 = vsel %vm1155_vm4, 1.0, %v3812_v50  ;;  %vm4329_vm11 = vmand %vm1114_vm5, %vm1138_vm6 }
 0x10e   : > { %2922 = vmatmul.mubr.bf16.gmra.mrb[24].mxu0 %v3392_v21 }
 0x10f   : > { %2925 = vmatprep.mubr.bf16.mxu0 %v3393_v22  ;;  %v4253_v22 = vmul.f32 %v2613_v8, %v4221_v9 }
 0x116   : > { %2926 = vmatmul.mubr.bf16.gmra.mrb[28].mxu0 %v3394_v23 }
 0x117   : > { %2929 = vmatprep.mubr.bf16.mxu0 %v3395_v24 }
 0x11e   : > { %2930 = vmatmul.mubr.bf16.gmra.mrb[32].mxu0 %v3396_v25  ;;  %v4271_v25 = vadd.s32 384, %v4150_v42 }
 0x11f   : > { %2933 = vmatprep.mubr.bf16.mxu0 %v3397_v26 }
 0x120   : > { %vm1105_vm7 = vcmp.ge.s32.totalorder %v4271_v25, %v4159_v45  ;;  %vm1129_vm8 = vcmp.lt.s32.totalorder %v4271_v25, %v4162_v46  ;;  %vm1137_vm3 = vcmp.lt.s32.totalorder %v4271_v25, %v4210_v6  ;;  %vm1109_vm5 = vcmp.ge.s32.totalorder %v4271_v25, %v4200_v63 }
 0x121   : > { %vm4350_vm14 = vmand %vm1105_vm7, %vm1129_vm8  ;;  %vm1133_vm6 = vcmp.lt.s32.totalorder %v4271_v25, %v4202_v0 }
 0x126   : > { %2934 = vmatmul.mubr.bf16.gmra.mrb[36].mxu0 %v3398_v27 }
 0x127   : > { %2937 = vmatprep.mubr.bf16.mxu0 %v3399_v28  ;;  %v1201_v28 = vsub.s32 2, %v4148_v41 }
 0x12e   : > { %2938 = vmatmul.mubr.bf16.gmra.mrb[40].mxu0 %v3400_v29  ;;  %v4280_v29 = vadd.f32 %v4177_v52, %v4253_v22 }
 0x12f   : > { %2941 = vmatprep.mubr.bf16.mxu0 %v3401_v30  ;;  %v4283_v30 = vadd.s32 256, %v4150_v42 }
 0x131   : > { %vm1104_vm9 = vcmp.ge.s32.totalorder %v4283_v30, %v4159_v45  ;;  %vm1128_vm10 = vcmp.lt.s32.totalorder %v4283_v30, %v4162_v46  ;;  %vm1132_vm13 = vcmp.lt.s32.totalorder %v4283_v30, %v4202_v0  ;;  %vm1112_vm1 = vcmp.ge.s32.totalorder %v4283_v30, %v4208_v5 }
 0x132   : > { %vm1136_vm4 = vcmp.lt.s32.totalorder %v4283_v30, %v4210_v6 }
 0x133   : > { %vm1152_vm7 = vmand %vm1112_vm1, %vm1136_vm4  ;;  %vm1463_vm4 = vcmask 261120  }
 0x136   : > { %2942 = vmatmul.mubr.bf16.gmra.mrb[44].mxu0 %v3402_v31 }
 0x137   : > { %2945 = vmatprep.mubr.bf16.mxu0 %v3403_v32  ;;  %v2618_v32 = vsel %vm4236_vm12, 1.0, %v3812_v50  ;;  %vm1108_vm12 = vcmp.ge.s32.totalorder %v4283_v30, %v4200_v63 }
 0x13e   : > { %2946 = vmatmul.mubr.bf16.gmra.mrb[48].mxu0 %v3404_v33  ;;  %v2617_v33 = vsel %vm4245_vm15, 1.0, %v3812_v50  ;;  %vm4371_vm15 = vmand %vm1104_vm9, %vm1128_vm10  ;;  %vm1117_vm9 = vcmp.ge.s32.totalorder %v4271_v25, %v4232_v11  ;;  %vm1141_vm10 = vcmp.lt.s32.totalorder %v4271_v25, %v4249_v19 }
 0x13f   : > { %2949 = vmatprep.mubr.bf16.mxu0 %v3405_v34  ;;  %v2622_v34 = vsel %vm4261_vm0, 1.0, %v3812_v50  ;;  %v4357_v3 = vmul.f32 %v2617_v33, %v4221_v9  ;;  %vm4389_vm0 = vmand %vm1108_vm12, %vm1132_vm13  ;;  %v2615_v23 = vsel %vm4371_vm15, 1.0, %v3812_v50  ;;  %vm1116_vm12 = vcmp.ge.s32.totalorder %v4283_v30, %v4232_v11 }
 0x140   : > { %vm1140_vm13 = vcmp.lt.s32.totalorder %v4283_v30, %v4249_v19  ;;  %vm4478_vm15 = vmand %vm1117_vm9, %vm1141_vm10  ;;  %vm1537_vm10 = vcmask 64512  }
 0x146   : > { %2950 = vmatmul.mubr.bf16.gmra.mrb[52].mxu0 %v3406_v35  ;;  %v2621_v35 = vsel %vm1150_vm2, 1.0, %v3812_v50  ;;  %vm1113_vm2 = vcmp.ge.s32.totalorder %v4271_v25, %v4208_v5 }
 0x147   : > { %2953 = vmatprep.mubr.bf16.mxu0 %v3407_v36  ;;  %v4363_v8 = vmul.f32 %v2621_v35, %v4221_v9  ;;  %vm4433_vm8 = vmand %vm1113_vm2, %vm1137_vm3 }
 0x148   : > { %v2624_v30 = vsel %vm4433_vm8, 1.0, %v3812_v50 }
 0x14e   : > { %2954 = vmatmul.mubr.bf16.gmra.mrb[56].mxu0 %v3408_v37 }
 0x14f   : > { %2957 = vmatprep.mubr.bf16.mxu0 %v3409_v38 }
 0x156   : > { %2958 = vmatmul.mubr.bf16.gmra.mrb[60].mxu0 %v3410_v39 }
 0x1b1   : > { %v2899_v57 = vpop.f32.mrb[0].mxu0 }
 0x1b2   : > { %v777_v59 = vadd.f32 %v2899_v57, %v4186_v54  ;;  %v768_v60 = vpop.f32.mrb[1].mxu0 }
 0x1b3   : > { %v769_v61 = vadd.f32 %v4186_v54, %v768_v60  ;;  %v2900_v62 = vpop.f32.mrb[2].mxu0 }
 0x1b4   : > { %3411 = vtanh.f32 %v777_v59  ;;  %v780_v1 = vadd.f32 %v2900_v62, %v4186_v54  ;;  %v771_v2 = vpop.f32.mrb[3].mxu0  ;;  %v4342_v62 = vmul.f32 %v2618_v32, %v4173_v49 }
 0x1b5   : > { %3413 = vtanh.f32 %v769_v61  ;;  %v772_v4 = vadd.f32 %v4186_v54, %v771_v2  ;;  %v4339_v61 = vrot.slane %v4166_v48, %v1201_v28 }
 0x1b6   : > { %3415 = vtanh.f32 %v780_v1 }
 0x1b7   : > { %3417 = vtanh.f32 %v772_v4  ;;  %v4360_v4 = vmul.f32 %v2622_v34, %v4173_v49  ;;  %v2623_v34 = vsel %vm1152_vm7, 1.0, %v3812_v50 }
 0x1b8   : > { %v4492_v19 = vmul.f32 %v2623_v34, %v4339_v61 }
 0x1b9   : > { %v2903_v10 = vpop.f32.mrb[4].mxu0 }
 0x1ba   : > { %v793_v13 = vadd.f32 %v2903_v10, %v4186_v54  ;;  %v784_v14 = vpop.f32.mrb[5].mxu0 }
 0x1bb   : > { %v785_v16 = vadd.f32 %v4186_v54, %v784_v14  ;;  %v2904_v17 = vpop.f32.mrb[6].mxu0  ;;  %v2625_v14 = vsel %vm4329_vm11, 1.0, %v3812_v50  ;;  %vm4449_vm11 = vmand %vm1109_vm5, %vm1133_vm6 }
 0x1bc   : > { %3419 = vtanh.f32 %v793_v13  ;;  %v796_v20 = vadd.f32 %v2904_v17, %v4186_v54  ;;  %v787_v21 = vpop.f32.mrb[7].mxu0  ;;  %v4378_v13 = vmul.f32 %v2626_v55, %v4173_v49  ;;  %v4398_v49 = vrot.slane %v4166_v48, %v1205_v47 }
 0x1bd   : > { %3421 = vtanh.f32 %v785_v16  ;;  %v788_v24 = vadd.f32 %v4186_v54, %v787_v21  ;;  %v2616_v48 = vsel %vm4350_vm14, 1.0, %v3812_v50  ;;  %vm1156_vm14 = vmand %vm1116_vm12, %vm1140_vm13 }
 0x1be   : > { %v4273_v26 = vpop.eup %3411  ;;  %3423 = vtanh.f32 %v796_v20  ;;  %v4462_v0 = vmul.f32 %v2616_v48, %v4398_v49  ;;  %v2627_v47 = vsel %vm1156_vm14, 1.0, %v3812_v50 }
 0x1bf   : > { %v4275_v27 = vpop.eup %3413  ;;  %3425 = vtanh.f32 %v788_v24  ;;  %v2619_v24 = vsel %vm4389_vm0, 1.0, %v3812_v50  ;;  %v4515_v45 = vmul.f32 %v2627_v47, %v4339_v61  ;;  %vm3814_vm0 = vmmov 0  }
 0x1c0   : > { %v4285_v31 = vpop.eup %3415  ;;  %v4489_v55 = vmul.f32 %v2619_v24, %v4339_v61 }
 0x1c1   : > { %v4300_v36 = vpop.eup %3417  ;;  %v2907_v37 = vpop.f32.mrb[8].mxu0  ;;  %v3123_v38 = vpack.c.bf16 %v4285_v31, %v4273_v26 }
 0x1c2   : > { %v809_v39 = vadd.f32 %v2907_v37, %v4186_v54  ;;  %v800_v40 = vpop.f32.mrb[9].mxu0  ;;  %v3119_v44 = vpack.c.bf16 %v4300_v36, %v4275_v27 }
 0x1c3   : > { %v801_v51 = vadd.f32 %v4186_v54, %v800_v40  ;;  %v2908_v52 = vpop.f32.mrb[10].mxu0  ;;  %v4467_v40 = vmul.f32 %v2615_v23, %v4339_v61 }
 0x1c4   : > { %3427 = vtanh.f32 %v809_v39  ;;  %v812_v57 = vadd.f32 %v2908_v52, %v4186_v54  ;;  %v803_v58 = vpop.f32.mrb[11].mxu0  ;;  %v4459_v39 = vmul.f32 %v2625_v14, %v4221_v9  ;;  %v2620_v52 = vsel %vm4449_vm11, 1.0, %v3812_v50 }
 0x1c5   : > { %3429 = vtanh.f32 %v801_v51  ;;  %v804_v60 = vadd.f32 %v4186_v54, %v803_v58  ;;  %v1228_v25 = vadd.f32 %v4280_v29, %v4467_v40  ;;  %v1232_v58 = vadd.f32 %v4342_v62, %v4357_v3 }
 0x1c6   : > { %v4354_v2 = vpop.eup %3419  ;;  %3431 = vtanh.f32 %v812_v57  ;;  %v1237_v57 = vadd.f32 %v4360_v4, %v4363_v8  ;;  %v1242_v59 = vadd.f32 %v4378_v13, %v4459_v39  ;;  %v4509_v14 = vmul.f32 %v2624_v30, %v4398_v49 }
 0x1c7   : > { %v4375_v12 = vpop.eup %3421  ;;  %3433 = vtanh.f32 %v804_v60  ;;  %v2628_v29 = vsel %vm4478_vm15, 1.0, %v3812_v50  ;;  %v1233_v33 = vadd.f32 %v1232_v58, %v4489_v55 }
 0x1c8   : > { %v4395_v46 = vpop.eup %3423  ;;  %v1238_v23 = vadd.f32 %v1237_v57, %v4492_v19  ;;  %v1243_v61 = vadd.f32 %v1242_v59, %v4515_v45 }
 0x1c9   : > { %v4406_v15 = vpop.eup %3425  ;;  %v2911_v16 = vpop.f32.mrb[12].mxu0  ;;  %v3131_v17 = vpack.c.bf16 %v4395_v46, %v4354_v2 }
 0x1ca   : > { %v825_v18 = vadd.f32 %v2911_v16, %v4186_v54  ;;  %v816_v20 = vpop.f32.mrb[13].mxu0  ;;  %v3127_v21 = vpack.c.bf16 %v4406_v15, %v4375_v12  ;;  %v1239_v5 = vadd.f32 %v1238_v23, %v4509_v14 }
 0x1cb   : > { %v817_v28 = vadd.f32 %v4186_v54, %v816_v20  ;;  %v2912_v32 = vpop.f32.mrb[14].mxu0  ;;  %v1229_v20 = vadd.f32 %v1228_v25, %v4462_v0 }
 0x1cc   : > { %3435 = vtanh.f32 %v825_v18  ;;  %v828_v35 = vadd.f32 %v2912_v32, %v4186_v54  ;;  %v819_v37 = vpop.f32.mrb[15].mxu0  ;;  %v4524_v32 = vmul.f32 %v2620_v52, %v4398_v49  ;;  %1240 = vadd.xlane.f32.xlu1 %v1239_v5 }
 0x1cd   : > { %3437 = vtanh.f32 %v817_v28  ;;  %v820_v6 = vadd.f32 %v4186_v54, %v819_v37  ;;  %v4530_v37 = vmul.f32 %v2628_v29, %v4398_v49  ;;  %1230 = vadd.xlane.f32.xlu0 %v1229_v20 }
 0x1ce   : > { %v4464_v63 = vpop.eup %3427  ;;  %3439 = vtanh.f32 %v828_v35  ;;  %v1234_v30 = vadd.f32 %v1233_v33, %v4524_v32 }
 0x1cf   : > { %v4483_v51 = vpop.eup %3429  ;;  %3441 = vtanh.f32 %v820_v6  ;;  %v1244_v47 = vadd.f32 %v1243_v61, %v4530_v37 }
 0x1d0   : > { %v4494_v11 = vpop.eup %3431 }
 0x1d1   : > { %v4504_v60 = vpop.eup %3433  ;;  %v2915_v1 = vpop.f32.mrb[16].mxu0  ;;  %v3139_v10 = vpack.c.bf16 %v4494_v11, %v4464_v63  ;;  %1235 = vadd.xlane.f32.xlu0 %v1234_v30  ;;  %1245 = vadd.xlane.f32.xlu1 %v1244_v47 }
 0x1d2   : > { %v841_v16 = vadd.f32 %v2915_v1, %v4186_v54  ;;  %v832_v48 = vpop.f32.mrb[17].mxu0  ;;  %v3135_v18 = vpack.c.bf16 %v4504_v60, %v4483_v51 }
 0x1d3   : > { %v833_v24 = vadd.f32 %v4186_v54, %v832_v48  ;;  %v2916_v28 = vpop.f32.mrb[18].mxu0 }
 0x1d4   : > { %3443 = vtanh.f32 %v841_v16  ;;  %v844_v34 = vadd.f32 %v2916_v28, %v4186_v54  ;;  %v835_v35 = vpop.f32.mrb[19].mxu0 }
 0x1d5   : > { %3445 = vtanh.f32 %v833_v24  ;;  %v836_v6 = vadd.f32 %v4186_v54, %v835_v35 }
 0x1d6   : > { %v4535_v9 = vpop.eup %3435  ;;  %3447 = vtanh.f32 %v844_v34 }
 0x1d7   : > { %v4538_v52 = vpop.eup %3437  ;;  %3449 = vtanh.f32 %v836_v6 }
 0x1d8   : > { %v4540_v25 = vpop.eup %3439 }
 0x1d9   : > { %v4542_v49 = vpop.eup %3441  ;;  %v2919_v57 = vpop.f32.mrb[20].mxu0  ;;  %v3147_v58 = vpack.c.bf16 %v4540_v25, %v4535_v9 }
 0x1da   : > { %v857_v59 = vadd.f32 %v2919_v57, %v4186_v54  ;;  %v848_v1 = vpop.f32.mrb[21].mxu0  ;;  %v3143_v29 = vpack.c.bf16 %v4542_v49, %v4538_v52 }
 0x1db   : > { %v849_v16 = vadd.f32 %v4186_v54, %v848_v1  ;;  %v2920_v48 = vpop.f32.mrb[22].mxu0 }
 0x1dc   : > { %3451 = vtanh.f32 %v857_v59  ;;  %v860_v20 = vadd.f32 %v2920_v48, %v4186_v54  ;;  %v851_v23 = vpop.f32.mrb[23].mxu0 }
 0x1dd   : > { %3453 = vtanh.f32 %v849_v16  ;;  %v852_v24 = vadd.f32 %v4186_v54, %v851_v23 }
 0x1de   : > { %v3444_v28 = vpop.eup %3443  ;;  %3455 = vtanh.f32 %v860_v20 }
 0x1df   : > { %v3446_v33 = vpop.eup %3445  ;;  %3457 = vtanh.f32 %v852_v24 }
 0x1e0   : > { %v3448_v61 = vpop.eup %3447 }
 0x1e1   : > { %v3450_v34 = vpop.eup %3449  ;;  %v2923_v35 = vpop.f32.mrb[24].mxu0  ;;  %v3121_v5 = vpack.c.bf16 %v3448_v61, %v3444_v28 }
 0x1e2   : > { %v873_v6 = vadd.f32 %v2923_v35, %v4186_v54  ;;  %v864_v30 = vpop.f32.mrb[25].mxu0  ;;  %v3117_v47 = vpack.c.bf16 %v3450_v34, %v3446_v33 }
 0x1e3   : > { %v865_v57 = vadd.f32 %v4186_v54, %v864_v30  ;;  %v2924_v59 = vpop.f32.mrb[26].mxu0 }
 0x1e4   : > { %3459 = vtanh.f32 %v873_v6  ;;  %v876_v1 = vadd.f32 %v2924_v59, %v4186_v54  ;;  %v867_v16 = vpop.f32.mrb[27].mxu0  ;;  %3118 = vmatprep.subr.bf16.mxu1 %v3117_v47 }
 0x1e5   : > { %3461 = vtanh.f32 %v865_v57  ;;  %v868_v48 = vadd.f32 %v4186_v54, %v867_v16  ;;  %3120 = vmatpush3.bf16.msra.mxu1 %v3119_v44 }
 0x1e6   : > { %v3452_v20 = vpop.eup %3451  ;;  %3463 = vtanh.f32 %v876_v1  ;;  %3122 = vmatprep.subr.bf16.mxu1 %v3121_v5 }
 0x1e7   : > { %v3454_v23 = vpop.eup %3453  ;;  %3465 = vtanh.f32 %v868_v48 }
 0x1e8   : > { %v3456_v24 = vpop.eup %3455 }
 0x1e9   : > { %v3458_v28 = vpop.eup %3457  ;;  %v2927_v33 = vpop.f32.mrb[28].mxu0  ;;  %3124 = vmatpush3.bf16.msra.mxu1 %v3123_v38  ;;  %v3129_v61 = vpack.c.bf16 %v3456_v24, %v3452_v20 }
 0x1ea   : > { %v889_v34 = vadd.f32 %v2927_v33, %v4186_v54  ;;  %v880_v35 = vpop.f32.mrb[29].mxu0  ;;  %v3125_v6 = vpack.c.bf16 %v3458_v28, %v3454_v23 }
 0x1eb   : > { %v881_v27 = vadd.f32 %v4186_v54, %v880_v35  ;;  %v2928_v36 = vpop.f32.mrb[30].mxu0 }
 0x1ec   : > { %3467 = vtanh.f32 %v889_v34  ;;  %v892_v44 = vadd.f32 %v2928_v36, %v4186_v54  ;;  %v883_v5 = vpop.f32.mrb[31].mxu0  ;;  %3126 = vmatprep.subr.bf16.mxu1 %v3125_v6 }
 0x1ed   : > { %3469 = vtanh.f32 %v881_v27  ;;  %v884_v30 = vadd.f32 %v4186_v54, %v883_v5  ;;  %3128 = vmatpush3.bf16.msra.mxu1 %v3127_v21 }
 0x1ee   : > { %v3460_v26 = vpop.eup %3459  ;;  %3471 = vtanh.f32 %v892_v44  ;;  %3130 = vmatprep.subr.bf16.mxu1 %v3129_v61 }
 0x1ef   : > { %v3462_v31 = vpop.eup %3461  ;;  %3473 = vtanh.f32 %v884_v30 }
 0x1f0   : > { %v3464_v38 = vpop.eup %3463 }
 0x1f1   : > { %v3466_v47 = vpop.eup %3465  ;;  %v2931_v57 = vpop.f32.mrb[32].mxu0  ;;  %3132 = vmatpush3.bf16.msra.mxu1 %v3131_v17  ;;  %v3137_v59 = vpack.c.bf16 %v3464_v38, %v3460_v26 }
 0x1f2   : > { %v905_v1 = vadd.f32 %v2931_v57, %v4186_v54  ;;  %v896_v16 = vpop.f32.mrb[33].mxu0  ;;  %v3133_v48 = vpack.c.bf16 %v3466_v47, %v3462_v31 }
 0x1f3   : > { %v897_v12 = vadd.f32 %v4186_v54, %v896_v16  ;;  %v2932_v15 = vpop.f32.mrb[34].mxu0 }
 0x1f4   : > { %3475 = vtanh.f32 %v905_v1  ;;  %v908_v21 = vadd.f32 %v2932_v15, %v4186_v54  ;;  %v899_v20 = vpop.f32.mrb[35].mxu0  ;;  %3134 = vmatprep.subr.bf16.mxu1 %v3133_v48 }
 0x1f5   : > { %3477 = vtanh.f32 %v897_v12  ;;  %v900_v23 = vadd.f32 %v4186_v54, %v899_v20  ;;  %3136 = vmatpush3.bf16.msra.mxu1 %v3135_v18 }
 0x1f6   : > { %v3468_v2 = vpop.eup %3467  ;;  %3479 = vtanh.f32 %v908_v21  ;;  %3138 = vmatprep.subr.bf16.mxu1 %v3137_v59 }
 0x1f7   : > { %v3470_v46 = vpop.eup %3469  ;;  %3481 = vtanh.f32 %v900_v23 }
 0x1f8   : > { %v3472_v17 = vpop.eup %3471 }
 0x1f9   : > { %v3474_v24 = vpop.eup %3473  ;;  %v2935_v28 = vpop.f32.mrb[36].mxu0  ;;  %3140 = vmatpush3.bf16.msra.mxu1 %v3139_v10  ;;  %v3145_v33 = vpack.c.bf16 %v3472_v17, %v3468_v2 }
 0x1fa   : > { %v921_v61 = vadd.f32 %v2935_v28, %v4186_v54  ;;  %v912_v34 = vpop.f32.mrb[37].mxu0  ;;  %v3141_v35 = vpack.c.bf16 %v3474_v24, %v3470_v46 }
 0x1fb   : > { %v913_v51 = vadd.f32 %v4186_v54, %v912_v34  ;;  %v2936_v60 = vpop.f32.mrb[38].mxu0 }
 0x1fc   : > { %3483 = vtanh.f32 %v921_v61  ;;  %v924_v18 = vadd.f32 %v2936_v60, %v4186_v54  ;;  %v915_v6 = vpop.f32.mrb[39].mxu0  ;;  %3142 = vmatprep.subr.bf16.mxu1 %v3141_v35 }
 0x1fd   : > { %3485 = vtanh.f32 %v913_v51  ;;  %v916_v27 = vadd.f32 %v4186_v54, %v915_v6  ;;  %3144 = vmatpush3.bf16.msra.mxu1 %v3143_v29 }
 0x1fe   : > { %v4589_v63 = vpop.eup %3475  ;;  %3487 = vtanh.f32 %v924_v18  ;;  %3146 = vmatprep.subr.bf16.mxu1 %v3145_v33 }
 0x1ff   : > { %v4591_v11 = vpop.eup %3477  ;;  %3489 = vtanh.f32 %v916_v27 }
 0x200   : > { %v4593_v10 = vpop.eup %3479 }
 0x201   : > { %v4595_v36 = vpop.eup %3481  ;;  %v2939_v44 = vpop.f32.mrb[40].mxu0  ;;  %3148 = vmatpush3.bf16.msra.mxu1 %v3147_v58  ;;  %v3155_v52 = vpack.c.bf16 %v4593_v10, %v4589_v63 }
 0x202   : > { %v937_v49 = vadd.f32 %v2939_v44, %v4186_v54  ;;  %v928_v29 = vpop.f32.mrb[41].mxu0  ;;  %v3151_v5 = vpack.c.bf16 %v4595_v36, %v4591_v11 }
 0x203   : > { %v929_v30 = vadd.f32 %v4186_v54, %v928_v29  ;;  %v2940_v26 = vpop.f32.mrb[42].mxu0 }
 0x204   : > { %3491 = vtanh.f32 %v937_v49  ;;  %v940_v31 = vadd.f32 %v2940_v26, %v4186_v54  ;;  %v931_v38 = vpop.f32.mrb[43].mxu0  ;;  %1312 = vmatmul.mubr.f32.vlgmr.msra.gmra.mrb[0].mxu1 %v4253_v22 }
 0x205   : > { %3493 = vtanh.f32 %v929_v30  ;;  %v932_v9 = vadd.f32 %v4186_v54, %v931_v38  ;;  %1316 = vmatprep.mubr.f32.mxu1 %v4342_v62 }
 0x206   : > { %v4610_v25 = vpop.eup %3483  ;;  %3495 = vtanh.f32 %v940_v31 }
 0x207   : > { %v4612_v58 = vpop.eup %3485  ;;  %3497 = vtanh.f32 %v932_v9 }
 0x208   : > { %v4614_v47 = vpop.eup %3487  ;;  %1317 = vmatmul.mubr.f32.gmra.mrb[2].mxu1 %v4357_v3 }
 0x209   : > { %v4617_v57 = vpop.eup %3489  ;;  %v2943_v59 = vpop.f32.mrb[44].mxu0  ;;  %v3163_v22 = vpack.c.bf16 %v4614_v47, %v4610_v25  ;;  %1321 = vmatprep.mubr.f32.mxu1 %v4360_v4  ;;  %v3813_v25 = vmov 0.0|0.0  }
 0x20a   : > { %v953_v62 = vadd.f32 %v2943_v59, %v4186_v54  ;;  %v944_v1 = vpop.f32.mrb[45].mxu0  ;;  %v3159_v16 = vpack.c.bf16 %v4617_v57, %v4612_v58 }
 0x20b   : > { %v945_v48 = vadd.f32 %v4186_v54, %v944_v1  ;;  %v2944_v12 = vpop.f32.mrb[46].mxu0 }
 0x20c   : > { %3499 = vtanh.f32 %v953_v62  ;;  %v956_v3 = vadd.f32 %v2944_v12, %v4186_v54  ;;  %v947_v15 = vpop.f32.mrb[47].mxu0  ;;  %1322 = vmatmul.mubr.f32.gmra.mrb[4].mxu1 %v4363_v8 }
 0x20d   : > { %3501 = vtanh.f32 %v945_v48  ;;  %v948_v21 = vadd.f32 %v4186_v54, %v947_v15  ;;  %1326 = vmatprep.mubr.f32.mxu1 %v4378_v13 }
 0x20e   : > { %v4630_v4 = vpop.eup %3491  ;;  %3503 = vtanh.f32 %v956_v3 }
 0x20f   : > { %v4632_v20 = vpop.eup %3493  ;;  %3505 = vtanh.f32 %v948_v21 }
 0x210   : > { %v4634_v23 = vpop.eup %3495  ;;  %1327 = vmatmul.mubr.f32.gmra.mrb[6].mxu1 %v4459_v39 }
 0x211   : > { %v4637_v2 = vpop.eup %3497  ;;  %v2947_v46 = vpop.f32.mrb[48].mxu0  ;;  %v3171_v8 = vpack.c.bf16 %v4634_v23, %v4630_v4  ;;  %1396 = vmatprep.mubr.f32.mxu1 %v4462_v0 }
 0x212   : > { %v969_v13 = vadd.f32 %v2947_v46, %v4186_v54  ;;  %v960_v17 = vpop.f32.mrb[49].mxu0  ;;  %v3167_v24 = vpack.c.bf16 %v4637_v2, %v4632_v20 }
 0x213   : > { %v961_v28 = vadd.f32 %v4186_v54, %v960_v17  ;;  %v2948_v33 = vpop.f32.mrb[50].mxu0 }
 0x214   : > { %3507 = vtanh.f32 %v969_v13  ;;  %v972_v39 = vadd.f32 %v2948_v33, %v4186_v54  ;;  %v963_v61 = vpop.f32.mrb[51].mxu0 }
 0x215   : > { %3509 = vtanh.f32 %v961_v28  ;;  %v964_v34 = vadd.f32 %v4186_v54, %v963_v61 }
 0x216   : > { %v4648_v35 = vpop.eup %3499  ;;  %3511 = vtanh.f32 %v972_v39 }
 0x217   : > { %v4650_v0 = vpop.eup %3501  ;;  %3513 = vtanh.f32 %v964_v34 }
 0x218   : > { %v4652_v51 = vpop.eup %3503 }
 0x219   : > { %v4654_v60 = vpop.eup %3505  ;;  %v2951_v18 = vpop.f32.mrb[52].mxu0  ;;  %v3179_v6 = vpack.c.bf16 %v4652_v51, %v4648_v35 }
 0x21a   : > { %v985_v27 = vadd.f32 %v2951_v18, %v4186_v54  ;;  %v976_v44 = vpop.f32.mrb[53].mxu0  ;;  %v3175_v49 = vpack.c.bf16 %v4654_v60, %v4650_v0 }
 0x21b   : > { %v977_v29 = vadd.f32 %v4186_v54, %v976_v44  ;;  %v2952_v30 = vpop.f32.mrb[54].mxu0 }
 0x21c   : > { %3515 = vtanh.f32 %v985_v27  ;;  %v988_v26 = vadd.f32 %v2952_v30, %v4186_v54  ;;  %v979_v31 = vpop.f32.mrb[55].mxu0 }
 0x21d   : > { %3517 = vtanh.f32 %v977_v29  ;;  %v980_v38 = vadd.f32 %v4186_v54, %v979_v31 }
 0x21e   : > { %v3508_v9 = vpop.eup %3507  ;;  %3519 = vtanh.f32 %v988_v26 }
 0x21f   : > { %v3510_v59 = vpop.eup %3509  ;;  %3521 = vtanh.f32 %v980_v38 }
 0x220   : > { %v3512_v62 = vpop.eup %3511 }
 0x221   : > { %v3514_v1 = vpop.eup %3513  ;;  %v2955_v48 = vpop.f32.mrb[56].mxu0  ;;  %v3153_v12 = vpack.c.bf16 %v3512_v62, %v3508_v9 }
 0x222   : > { %v1001_v3 = vadd.f32 %v2955_v48, %v4186_v54  ;;  %v992_v15 = vpop.f32.mrb[57].mxu0  ;;  %v3149_v21 = vpack.c.bf16 %v3514_v1, %v3510_v59 }
 0x223   : > { %v993_v46 = vadd.f32 %v4186_v54, %v992_v15  ;;  %v2956_v13 = vpop.f32.mrb[58].mxu0 }
 0x224   : > { %3523 = vtanh.f32 %v1001_v3  ;;  %v1004_v17 = vadd.f32 %v2956_v13, %v4186_v54  ;;  %v995_v28 = vpop.f32.mrb[59].mxu0  ;;  %3150 = vmatprep.subr.bf16.mxu1 %v3149_v21 }
 0x225   : > { %3525 = vtanh.f32 %v993_v46  ;;  %v996_v33 = vadd.f32 %v4186_v54, %v995_v28  ;;  %3152 = vmatpush3.bf16.msra.mxu1 %v3151_v5 }
 0x226   : > { %v3516_v39 = vpop.eup %3515  ;;  %3527 = vtanh.f32 %v1004_v17  ;;  %3154 = vmatprep.subr.bf16.mxu1 %v3153_v12 }
 0x227   : > { %v3518_v61 = vpop.eup %3517  ;;  %3529 = vtanh.f32 %v996_v33 }
 0x228   : > { %v3520_v34 = vpop.eup %3519 }
 0x229   : > { %v3522_v18 = vpop.eup %3521  ;;  %v2959_v27 = vpop.f32.mrb[60].mxu0  ;;  %3156 = vmatpush3.bf16.msra.mxu1 %v3155_v52  ;;  %v3161_v44 = vpack.c.bf16 %v3520_v34, %v3516_v39 }
 0x22a   : > { %v1017_v29 = vadd.f32 %v2959_v27, %v4186_v54  ;;  %v1008_v30 = vpop.f32.mrb[61].mxu0  ;;  %v3157_v26 = vpack.c.bf16 %v3522_v18, %v3518_v61 }
 0x22b   : > { %v1009_v11 = vadd.f32 %v4186_v54, %v1008_v30  ;;  %v2960_v36 = vpop.f32.mrb[62].mxu0 }
 0x22c   : > { %3531 = vtanh.f32 %v1017_v29  ;;  %v1020_v5 = vadd.f32 %v2960_v36, %v4186_v54  ;;  %v1011_v31 = vpop.f32.mrb[63].mxu0  ;;  %3158 = vmatprep.subr.bf16.mxu1 %v3157_v26 }
 0x22d   : > { %3533 = vtanh.f32 %v1009_v11  ;;  %v1012_v38 = vadd.f32 %v4186_v54, %v1011_v31  ;;  %3160 = vmatpush3.bf16.msra.mxu1 %v3159_v16 }
 0x22e   : > { %v3524_v63 = vpop.eup %3523  ;;  %3535 = vtanh.f32 %v1020_v5  ;;  %3162 = vmatprep.subr.bf16.mxu1 %v3161_v44 }
 0x22f   : > { %v3526_v10 = vpop.eup %3525  ;;  %3537 = vtanh.f32 %v1012_v38  ;;  %v1429_v38 = vmul.u32 4, %v4148_v41 }
 0x230   : > { %v3528_v52 = vpop.eup %3527 }
 0x231   : > { %v3530_v9 = vpop.eup %3529  ;;  %3164 = vmatpush3.bf16.msra.mxu1 %v3163_v22  ;;  %v3169_v59 = vpack.c.bf16 %v3528_v52, %v3524_v63  ;;  %v1431_v63 = vmul.u32 4, %v4153_v43  ;;  %vm1430_vm1 = vcmp.ge.s32.totalorder %v4150_v42, %v1429_v38  ;;  %v2639_v43 = vld [vmem:[%s4919_s6] ss:$0 sm:$0xff] }
 0x232   : > { %v3165_v62 = vpack.c.bf16 %v3530_v9, %v3526_v10 }
 0x233   : > { %vm1432_vm2 = vcmp.lt.s32.totalorder %v4150_v42, %v1431_v63 }
 0x234   : > { %3166 = vmatprep.subr.bf16.mxu1 %v3165_v62  ;;  %vm4739_vm3 = vmand %vm1430_vm1, %vm1432_vm2 }
 0x235   : > { %3168 = vmatpush3.bf16.msra.mxu1 %v3167_v24 }
 0x236   : > { %v3532_v54 = vpop.eup %3531  ;;  %3170 = vmatprep.subr.bf16.mxu1 %v3169_v59 }
 0x237   : > { %v3534_v58 = vpop.eup %3533 }
 0x238   : > { %v3536_v57 = vpop.eup %3535 }
 0x239   : > { %v3538_v16 = vpop.eup %3537  ;;  %3172 = vmatpush3.bf16.msra.mxu1 %v3171_v8  ;;  %v3177_v1 = vpack.c.bf16 %v3536_v57, %v3532_v54  ;;  %v4746_v57 = vsel %vm4739_vm3, 1.0, %v3812_v50 }
 0x23a   : > { %v3173_v48 = vpack.c.bf16 %v3538_v16, %v3534_v58  ;;  %v1441_v16 = vadd.s32 1, %v4150_v42 }
 0x23c   : > { %3174 = vmatprep.subr.bf16.mxu1 %v3173_v48  ;;  %v1442_v48 = vmul.u32 4, %v1441_v16 }
 0x23d   : > { %3176 = vmatpush3.bf16.msra.mxu1 %v3175_v49 }
 0x23e   : > { %3178 = vmatprep.subr.bf16.mxu1 %v3177_v1  ;;  %v1436_v1 = vmul.u32 4, %v4150_v42  ;;  %vm1443_vm6 = vcmp.lt.s32.totalorder %v4148_v41, %v1442_v48  ;;  %vm1444_vm9 = vcmp.lt.s32.totalorder %v4181_v53, %v1442_v48  ;;  %vm1445_vm13 = vcmp.lt.s32.totalorder %v4190_v56, %v1442_v48 }
 0x23f   : > { %vm1446_vm1 = vcmp.lt.s32.totalorder %v4217_v7, %v1442_v48 }
 0x240   : > { %vm1437_vm5 = vcmp.ge.s32.totalorder %v4148_v41, %v1436_v1  ;;  %vm1438_vm8 = vcmp.ge.s32.totalorder %v4181_v53, %v1436_v1  ;;  %vm1439_vm12 = vcmp.ge.s32.totalorder %v4190_v56, %v1436_v1  ;;  %vm1440_vm15 = vcmp.ge.s32.totalorder %v4217_v7, %v1436_v1 }
 0x241   : > { %3180 = vmatpush3.bf16.msra.mxu1 %v3179_v6  ;;  %vm1447_vm7 = vmand %vm1437_vm5, %vm1443_vm6 }
 0x242   : > { %3181 = vmatprep.subr.bf16.mxu1 %v3813_v25  ;;  %vm1448_vm11 = vmand %vm1438_vm8, %vm1444_vm9 }
 0x243   : > { %vm1449_vm14 = vmand %vm1439_vm12, %vm1445_vm13 }
 0x244   : > { %1397 = vmatmul.mubr.f32.vlgmr.msra.gmra.mrb[8].mxu1 %v4467_v40  ;;  %vm1450_vm2 = vmand %vm1440_vm15, %vm1446_vm1  ;;  %vm2066_vm1 = vcmp.eq.s32.totalorder %v4181_v53, %v4150_v42  ;;  %v3815_v53 = vmov 1.0  }
 0x245   : > { %1401 = vmatprep.mubr.f32.mxu1 %v4524_v32 }
 0x248   : > { %1402 = vmatmul.mubr.f32.gmra.mrb[10].mxu1 %v4489_v55 }
 0x249   : > { %1406 = vmatprep.mubr.f32.mxu1 %v4509_v14 }
 0x24c   : > { %1407 = vmatmul.mubr.f32.gmra.mrb[12].mxu1 %v4492_v19 }
 0x24d   : > { %1411 = vmatprep.mubr.f32.mxu1 %v4530_v37 }
 0x250   : > { %1412 = vmatmul.mubr.f32.gmra.mrb[14].mxu1 %v4515_v45 }
 0x251   : > { %2969 = vmatprep.mubr.msk.f32.mxu1 %vm3814_vm0, %v3812_v50 }
 0x259   : > { %v4712_v0 = vpop.xlane.xlu1 %1240 }
 0x25a   : > { %v4706_v45 = vpop.xlane.xlu0 %1230  ;;  %v1419_v51 = vmax.f32 %v4712_v0, 1e-09 }
 0x25b   : > { %v1417_v24 = vmax.f32 %v4706_v45, 1e-09  ;;  %vm2077_vm15 = vcmp.gt.f32.partialorder %v4706_v45, 0.0 }
 0x25d   : > { %3539 = vrcp.f32 %v1417_v24  ;;  %v1679_v24 = vld [vmem:[#allocation8 + $0x20] sm:$0xff] }
 0x25e   : > { %v4708_v8 = vpop.xlane.xlu0 %1235  ;;  %v4715_v60 = vpop.xlane.xlu1 %1245 }
 0x25f   : > { %v1418_v35 = vmax.f32 %v4708_v8, 1e-09  ;;  %v1420_v49 = vmax.f32 %v4715_v60, 1e-09 }
 0x261   : > { %3541 = vrcp.f32 %v1418_v35  ;;  %v1680_v35 = vld [vmem:[#allocation8 + $0x28] sm:$0xff] }
 0x262   : > { %3543 = vrcp.f32 %v1419_v51  ;;  %v3195_v51 = vpack.c.bf16 %v1680_v35, %v1679_v24 }
 0x263   : > { %3545 = vrcp.f32 %v1420_v49  ;;  %v1682_v49 = vld [vmem:[#allocation8 + $0x38] sm:$0xff] }
 0x267   : > { %v3540_v46 = vpop.eup %3539 }
 0x26b   : > { %v3542_v28 = vpop.eup %3541 }
 0x26c   : > { %v3544_v11 = vpop.eup %3543 }
 0x26d   : > { %v3546_v10 = vpop.eup %3545 }
 0x2d7   : > { %v2741_v40 = vpop.f32.mrb[0].mxu1 }
 0x2d8   : > { %v2742_v47 = vpop.f32.mrb[1].mxu1 }
 0x2d9   : > { %v2743_v32 = vadd.f32 %v2742_v47, %v2741_v40  ;;  %v4757_v40 = vsel %vm1447_vm7, 1.0, %v3812_v50 }
 0x2db   : > { %v2744_v22 = vpop.f32.mrb[2].mxu1 }
 0x2dc   : > { %v2745_v55 = vpop.f32.mrb[3].mxu1 }
 0x2dd   : > { %v2746_v4 = vadd.f32 %v2745_v55, %v2744_v22  ;;  %v4769_v55 = vsel %vm1449_vm14, 1.0, %v3812_v50  ;;  %vm2065_vm14 = vcmp.eq.s32.totalorder %v4148_v41, %v4150_v42 }
 0x2df   : > { %v2747_v14 = vpop.f32.mrb[4].mxu1 }
 0x2e0   : > { %v2748_v20 = vpop.f32.mrb[5].mxu1 }
 0x2e1   : > { %v2749_v19 = vadd.f32 %v2748_v20, %v2747_v14  ;;  %v1675_v14 = vld [vmem:[#allocation8] sm:$0xff]  ;;  %v1676_v20 = vld [vmem:[#allocation8 + $0x8] sm:$0xff] }
 0x2e3   : > { %v2750_v23 = vpop.f32.mrb[6].mxu1 }
 0x2e4   : > { %v2751_v37 = vpop.f32.mrb[7].mxu1 }
 0x2e5   : > { %v2752_v2 = vadd.f32 %v2751_v37, %v2750_v23  ;;  %v1677_v23 = vld [vmem:[#allocation8 + $0x10] sm:$0xff]  ;;  %v1678_v37 = vld [vmem:[#allocation8 + $0x18] sm:$0xff] }
 0x317   : > { %v2785_v6 = vpop.f32.mrb[8].mxu1 }
 0x318   : > { %v2786_v12 = vpop.f32.mrb[9].mxu1 }
 0x319   : > { %v2787_v3 = vadd.f32 %v2786_v12, %v2785_v6  ;;  %v1681_v6 = vld [vmem:[#allocation8 + $0x30] sm:$0xff] }
 0x31a   : > { %v3199_v12 = vpack.c.bf16 %v1682_v49, %v1681_v6 }
 0x31b   : > { %v1399_v15 = vadd.f32 %v2787_v3, %v2743_v32  ;;  %v2788_v21 = vpop.f32.mrb[10].mxu1  ;;  %v4766_v32 = vsel %vm1448_vm11, 1.0, %v3812_v50  ;;  %v1683_v3 = vld [vmem:[#allocation8 + $0x40] sm:$0xff] }
 0x31c   : > { %v2789_v13 = vpop.f32.mrb[11].mxu1 }
 0x31d   : > { %v2790_v17 = vadd.f32 %v2789_v13, %v2788_v21  ;;  %v4718_v33 = vmul.f32 %v3540_v46, %v1399_v15  ;;  %v1684_v15 = vld [vmem:[#allocation8 + $0x48] sm:$0xff]  ;;  %v1685_v46 = vld [vmem:[#allocation8 + $0x50] sm:$0xff]  ;;  %v1686_v13 = vld [vmem:[#allocation8 + $0x58] sm:$0xff] }
 0x31e   : > { %v3203_v21 = vpack.c.bf16 %v1684_v15, %v1683_v3  ;;  %v1785_v15 = vld [vmem:[#allocation10 + $0x10] sm:$0xff] }
 0x31f   : > { %v1404_v39 = vadd.f32 %v2790_v17, %v2746_v4  ;;  %v2791_v61 = vpop.f32.mrb[12].mxu1  ;;  %v1459_v44 = vmul.f32 %v4718_v33, %v4718_v33  ;;  %v4776_v4 = vsel %vm1450_vm2, 1.0, %v3812_v50  ;;  %v3207_v17 = vpack.c.bf16 %v1686_v13, %v1685_v46 }
 0x320   : > { %v2792_v34 = vpop.f32.mrb[13].mxu1  ;;  %vm2078_vm2 = vcmp.gt.f32.partialorder %v4708_v8, 0.0 }
 0x321   : > { %v4720_v18 = vmul.f32 %v3542_v28, %v1404_v39  ;;  %v2793_v27 = vadd.f32 %v2792_v34, %v2791_v61  ;;  %v1687_v28 = vld [vmem:[#allocation8 + $0x60] sm:$0xff]  ;;  %v1688_v39 = vld [vmem:[#allocation8 + $0x68] sm:$0xff]  ;;  %v1689_v34 = vld [vmem:[#allocation8 + $0x70] sm:$0xff] }
 0x322   : > { %v3211_v61 = vpack.c.bf16 %v1688_v39, %v1687_v28 }
 0x323   : > { %v1460_v29 = vmul.f32 %v4720_v18, %v4720_v18  ;;  %v1409_v30 = vadd.f32 %v2793_v27, %v2749_v19  ;;  %v2794_v26 = vpop.f32.mrb[14].mxu1  ;;  %v3187_v19 = vpack.c.bf16 %v1676_v20, %v1675_v14  ;;  %v1690_v27 = vld [vmem:[#allocation8 + $0x78] sm:$0xff] }
 0x324   : > { %v2795_v36 = vpop.f32.mrb[15].mxu1 }
 0x325   : > { %v2796_v5 = vadd.f32 %v2795_v36, %v2794_v26  ;;  %v3182_v31 = vpack.c.bf16 %v1460_v29, %v1459_v44  ;;  %v4728_v52 = vmul.f32 %v3544_v11, %v1409_v30  ;;  %v3215_v44 = vpack.c.bf16 %v1690_v27, %v1689_v34  ;;  %v1783_v29 = vld [vmem:[#allocation10] sm:$0xff]  ;;  %v1784_v30 = vld [vmem:[#allocation10 + $0x8] sm:$0xff] }
 0x326   : > { %v3219_v26 = vpack.c.bf16 %v1784_v30, %v1783_v29  ;;  %v1788_v34 = vld [vmem:[#allocation10 + $0x28] sm:$0xff] }
 0x327   : > { %v1414_v9 = vadd.f32 %v2796_v5, %v2752_v2  ;;  %3183 = vmatpush3.bf16.msra.mxu1 %v3182_v31  ;;  %v1461_v62 = vmul.f32 %v4728_v52, %v4728_v52  ;;  %v3191_v2 = vpack.c.bf16 %v1678_v37, %v1677_v23 }
 0x328   : > { %3184 = vmatprep.subr.bf16.mxu1 %v3813_v25 }
 0x329   : > { %v4731_v59 = vmul.f32 %v3546_v10, %v1414_v9 }
 0x32b   : > { %v1462_v54 = vmul.f32 %v4731_v59, %v4731_v59 }
 0x32d   : > { %v3185_v58 = vpack.c.bf16 %v1462_v54, %v1461_v62 }
 0x32f   : > { %3186 = vmatpush3.bf16.msra.mxu1 %v3185_v58 }
 0x332   : > { %2970 = vmatmul.mubr.msk.f32.vlgmr.msra.gmra.mrb[16].mxu1 %vm1463_vm4, %v4746_v57 }
 0x333   : > { %2974 = vmatprep.mubr.msk.f32.mxu1 %vm1537_vm10, %v4757_v40 }
 0x405   : > { %v1533_v47 = vpop.f32.mrb[16].mxu1 }
 0x406   : > { %v2971_v22 = vpop.f32.mrb[17].mxu1  ;;  %2972 = vmatprep.subr.mxu1 %v1533_v47 }
 0x407   : > { %2973 = vmatpush3.msra.mxu1 %v1533_v47 }
 0x408   : > { %2975 = vmatmul.mubr.msk.f32.vlgmr.msra.gmra.mrb[18].mxu1 %vm1537_vm10, %v4766_v32  ;;  %3188 = vmatprep.subr.bf16.mxu1 %v3187_v19 }
 0x409   : > { %2977 = vmatprep.mubr.msk.f32.mxu1 %vm1537_vm10, %v4769_v55  ;;  %3190 = vmatpush3.bf16.msra.mxu1 %v3187_v19 }
 0x40a   : > { %3192 = vmatprep.subr.bf16.mxu1 %v3191_v2 }
 0x40c   : > { %2978 = vmatmul.mubr.msk.f32.gmra.mrb[20].mxu1 %vm1537_vm10, %v4776_v4 }
 0x40d   : > { %3194 = vmatpush3.bf16.msra.mxu1 %v3191_v2 }
 0x40e   : > { %3196 = vmatprep.subr.bf16.mxu1 %v3195_v51 }
 0x411   : > { %3198 = vmatpush3.bf16.msra.mxu1 %v3195_v51 }
 0x412   : > { %3200 = vmatprep.subr.bf16.mxu1 %v3199_v12 }
 0x415   : > { %3202 = vmatpush3.bf16.msra.mxu1 %v3199_v12 }
 0x416   : > { %3204 = vmatprep.subr.bf16.mxu1 %v3203_v21 }
 0x419   : > { %3206 = vmatpush3.bf16.msra.mxu1 %v3203_v21  ;;  %v1786_v21 = vld [vmem:[#allocation10 + $0x18] sm:$0xff] }
 0x41a   : > { %3208 = vmatprep.subr.bf16.mxu1 %v3207_v17  ;;  %v3223_v28 = vpack.c.bf16 %v1786_v21, %v1785_v15 }
 0x41d   : > { %3210 = vmatpush3.bf16.msra.mxu1 %v3207_v17 }
 0x41e   : > { %3212 = vmatprep.subr.bf16.mxu1 %v3211_v61 }
 0x421   : > { %3214 = vmatpush3.bf16.msra.mxu1 %v3211_v61  ;;  %v1787_v61 = vld [vmem:[#allocation10 + $0x20] sm:$0xff] }
 0x422   : > { %3216 = vmatprep.subr.bf16.mxu1 %v3215_v44  ;;  %v3227_v30 = vpack.c.bf16 %v1788_v34, %v1787_v61 }
 0x425   : > { %3218 = vmatpush3.bf16.msra.mxu1 %v3215_v44 }
 0x426   : > { %3220 = vmatprep.subr.bf16.mxu1 %v3219_v26 }
 0x4db   : > { %v2976_v11 = vpop.f32.mrb[18].mxu1 }
 0x4dc   : > { %3547 = vrsqrt.f32 %v2976_v11  ;;  %v1616_v36 = vpop.f32.mrb[19].mxu1  ;;  %vm1644_vm5 = vcmp.eq.f32.partialorder %v2976_v11, inf  ;;  %vm1646_vm6 = vcmp.eq.f32.partialorder %v2976_v11, 0.0  ;;  %v1647_v9 = vand.u32 2147483648, %v2976_v11 }
 0x4dd   : > { %3549 = vrsqrt.f32 %v1616_v36  ;;  %vm1637_vm7 = vcmp.eq.f32.partialorder %v1616_v36, inf  ;;  %vm1639_vm8 = vcmp.eq.f32.partialorder %v1616_v36, 0.0  ;;  %v1640_v58 = vand.u32 2147483648, %v1616_v36 }
 0x4df   : > { %v2979_v5 = vpop.f32.mrb[20].mxu1 }
 0x4e0   : > { %3551 = vrsqrt.f32 %v2979_v5  ;;  %v1626_v31 = vpop.f32.mrb[21].mxu1  ;;  %vm1658_vm9 = vcmp.eq.f32.partialorder %v2979_v5, inf  ;;  %vm1660_vm11 = vcmp.eq.f32.partialorder %v2979_v5, 0.0  ;;  %v1661_v47 = vand.u32 2147483648, %v2979_v5 }
 0x4e1   : > { %3553 = vrsqrt.f32 %v1626_v31  ;;  %vm1651_vm12 = vcmp.eq.f32.partialorder %v1626_v31, inf  ;;  %v1654_v23 = vand.u32 2147483648, %v1626_v31  ;;  %vm1653_vm13 = vcmp.eq.f32.partialorder %v1626_v31, 0.0 }
 0x4e6   : > { %v3548_v38 = vpop.eup %3547 }
 0x4e7   : > { %v3550_v63 = vpop.eup %3549  ;;  %v1643_v10 = vmul.f32 %v3548_v38, %v2976_v11  ;;  %v1794_v38 = vld [vmem:[#allocation10 + $0x58] sm:$0xff] }
 0x4e8   : > { %v1636_v62 = vmul.f32 %v3550_v63, %v1616_v36 }
 0x4e9   : > { %v1645_v54 = vsel %vm1644_vm5, %v2976_v11, %v1643_v10  ;;  %v1790_v11 = vld [vmem:[#allocation10 + $0x38] sm:$0xff]  ;;  %v1795_v10 = vld [vmem:[#allocation10 + $0x60] sm:$0xff]  ;;  %vm2067_vm5 = vcmp.eq.s32.totalorder %v4190_v56, %v4150_v42 }
 0x4ea   : > { %v3552_v16 = vpop.eup %3551  ;;  %v1648_v1 = vsel %vm1646_vm6, %v1647_v9, %v1645_v54  ;;  %v1638_v48 = vsel %vm1637_vm7, %v1616_v36, %v1636_v62  ;;  %v1796_v9 = vld [vmem:[#allocation10 + $0x68] sm:$0xff]  ;;  %v1797_v54 = vld [vmem:[#allocation10 + $0x70] sm:$0xff]  ;;  %vm2079_vm6 = vcmp.gt.f32.partialorder %v4712_v0, 0.0  ;;  %vm2068_vm7 = vcmp.eq.s32.totalorder %v4217_v7, %v4150_v42 }
 0x4eb   : > { %v3554_v22 = vpop.eup %3553  ;;  %v1664_v14 = vmax.f32 %v1648_v1, 1e-12  ;;  %v1641_v20 = vsel %vm1639_vm8, %v1640_v58, %v1638_v48  ;;  %v1657_v19 = vmul.f32 %v3552_v16, %v2979_v5  ;;  %v3243_v62 = vpack.c.bf16 %v1796_v9, %v1795_v10  ;;  %v1798_v58 = vld [vmem:[#allocation10 + $0x78] sm:$0xff] }
 0x4ec   : > { %v1663_v37 = vmax.f32 %v1641_v20, 1e-12  ;;  %v1650_v2 = vmul.f32 %v3554_v22, %v1626_v31  ;;  %v3247_v16 = vpack.c.bf16 %v1798_v58, %v1797_v54  ;;  %v2646_v1 = vsel %vm2065_vm14, 1.0, %v3812_v50 }
 0x4ed   : > { %3555 = vrcp.f32 %v1664_v14  ;;  %v1659_v24 = vsel %vm1658_vm9, %v2979_v5, %v1657_v19  ;;  %v2650_v48 = vsel %vm2077_vm15, 1.0, %v3812_v50  ;;  %v2651_v22 = vsel %vm2078_vm2, 1.0, %v3812_v50 }
 0x4ee   : > { %3557 = vrcp.f32 %v1663_v37  ;;  %v1662_v35 = vsel %vm1660_vm11, %v1661_v47, %v1659_v24  ;;  %v1652_v51 = vsel %vm1651_vm12, %v1626_v31, %v1650_v2  ;;  %v1791_v31 = vld [vmem:[#allocation10 + $0x40] sm:$0xff]  ;;  %v2647_v47 = vsel %vm2066_vm1, 1.0, %v3812_v50 }
 0x4ef   : > { %v1666_v6 = vmax.f32 %v1662_v35, 1e-12  ;;  %v1655_v49 = vsel %vm1653_vm13, %v1654_v23, %v1652_v51  ;;  %v2089_v41 = vmul.f32 %v2650_v48, %v2646_v1  ;;  %v2090_v14 = vmul.f32 %v2651_v22, %v2647_v47 }
 0x4f0   : > { %v1665_v12 = vmax.f32 %v1655_v49, 1e-12  ;;  %vm2080_vm8 = vcmp.gt.f32.partialorder %v4715_v60, 0.0  ;;  %v2648_v8 = vsel %vm2067_vm5, 1.0, %v3812_v50  ;;  %v2652_v20 = vsel %vm2079_vm6, 1.0, %v3812_v50 }
 0x4f1   : > { %3559 = vrcp.f32 %v1666_v6  ;;  %v3259_v45 = vpack.c.bf16 %v2090_v14, %v2089_v41  ;;  %v2649_v56 = vsel %vm2068_vm7, 1.0, %v3812_v50  ;;  %v2653_v0 = vsel %vm2080_vm8, 1.0, %v3812_v50 }
 0x4f2   : > { %3561 = vrcp.f32 %v1665_v12  ;;  %v2091_v42 = vmul.f32 %v2652_v20, %v2648_v8  ;;  %v2092_v7 = vmul.f32 %v2653_v0, %v2649_v56 }
 0x4f4   : > { %v3263_v60 = vpack.c.bf16 %v2092_v7, %v2091_v42 }
 0x4f7   : > { %v3556_v3 = vpop.eup %3555 }
 0x4f8   : > { %v3558_v46 = vpop.eup %3557  ;;  %v4783_v13 = vmul.f32 %v3556_v3, %v4720_v18 }
 0x4f9   : > { %v1668_v17 = vmul.f32 %v3558_v46, %v4718_v33  ;;  %v1789_v33 = vld [vmem:[#allocation10 + $0x30] sm:$0xff] }
 0x4fa   : > { %v3231_v5 = vpack.c.bf16 %v1790_v11, %v1789_v33 }
 0x4fb   : > { %v3560_v39 = vpop.eup %3559  ;;  %3012 = vmatprep.mubr.f32.mxu1 %v1668_v17  ;;  %v4787_v27 = vpack.c.bf16 %v4783_v13, %v1668_v17 }
 0x4fc   : > { %v3562_v44 = vpop.eup %3561  ;;  %3013 = vmatmul.mubr.f32.vlgmr.msra.gmra.mrb[22].mxu1 %v4783_v13  ;;  %v4791_v29 = vmul.f32 %v3560_v39, %v4731_v59  ;;  %v1792_v59 = vld [vmem:[#allocation10 + $0x48] sm:$0xff] }
 0x4fd   : > { %3222 = vmatpush3.bf16.msra.mxu1 %v3219_v26  ;;  %v1672_v18 = vmul.f32 %v3562_v44, %v4728_v52  ;;  %v3235_v26 = vpack.c.bf16 %v1792_v59, %v1791_v31  ;;  %v1793_v52 = vld [vmem:[#allocation10 + $0x50] sm:$0xff] }
 0x4fe   : > { %3224 = vmatprep.subr.bf16.mxu1 %v3223_v28  ;;  %v3239_v63 = vpack.c.bf16 %v1794_v38, %v1793_v52 }
 0x4ff   : > { %3015 = vmatprep.mubr.f32.mxu1 %v1672_v18  ;;  %v4795_v36 = vpack.c.bf16 %v4791_v29, %v1672_v18 }
 0x500   : > { %3016 = vmatmul.mubr.f32.gmra.mrb[24].mxu1 %v4791_v29 }
 0x501   : > { %3226 = vmatpush3.bf16.msra.mxu1 %v3223_v28  ;;  %3050 = vmatprep.mubr.f32.mxu1 %v1668_v17 }
 0x502   : > { %3228 = vmatprep.subr.bf16.mxu1 %v3227_v30 }
 0x505   : > { %3230 = vmatpush3.bf16.msra.mxu1 %v3227_v30 }
 0x506   : > { %3232 = vmatprep.subr.bf16.mxu1 %v3231_v5 }
 0x509   : > { %3234 = vmatpush3.bf16.msra.mxu1 %v3231_v5 }
 0x50a   : > { %3236 = vmatprep.subr.bf16.mxu1 %v3235_v26 }
 0x50d   : > { %3238 = vmatpush3.bf16.msra.mxu1 %v3235_v26 }
 0x50e   : > { %3240 = vmatprep.subr.bf16.mxu1 %v3239_v63 }
 0x511   : > { %3242 = vmatpush3.bf16.msra.mxu1 %v3239_v63 }
 0x512   : > { %3244 = vmatprep.subr.bf16.mxu1 %v3243_v62 }
 0x515   : > { %3246 = vmatpush3.bf16.msra.mxu1 %v3243_v62 }
 0x516   : > { %3248 = vmatprep.subr.bf16.mxu1 %v3247_v16 }
 0x519   : > { %3250 = vmatpush3.bf16.msra.mxu1 %v3247_v16 }
 0x51a   : > { %3070 = vmatprep.subr.msk.mxu1 %vm4739_vm3, %v3815_v53 }
 0x51c   : > { %3051 = vmatmul.mubr.f32.vlgmr.msra.gmra.mrb[26].mxu1 %v4783_v13 }
 0x51d   : > { %3053 = vmatprep.mubr.f32.mxu1 %v1672_v18  ;;  %3071 = vmatpush3.msk.msra.mxu1 %vm4739_vm3, %v3815_v53 }
 0x51e   : > { %3260 = vmatprep.subr.bf16.mxu1 %v3259_v45 }
 0x520   : > { %3054 = vmatmul.mubr.f32.gmra.mrb[28].mxu1 %v4791_v29 }
 0x521   : > { %3072 = vmatprep.mubr.msk.f32.mxu1 %vm1537_vm10, %v4757_v40 }
 0x524   : > { %3073 = vmatmul.mubr.msk.f32.vlgmr.msra.gmra.mrb[30].mxu1 %vm1537_vm10, %v4766_v32 }
 0x525   : > { %3262 = vmatpush3.bf16.msra.mxu1 %v3259_v45  ;;  %3075 = vmatprep.mubr.msk.f32.mxu1 %vm1537_vm10, %v4769_v55  ;;  %v2640_v55 = vld [vmem:[%s4920_s7] ss:$0 sm:$0xff] }
 0x526   : > { %3264 = vmatprep.subr.bf16.mxu1 %v3263_v60 }
 0x528   : > { %3076 = vmatmul.mubr.msk.f32.gmra.mrb[32].mxu1 %vm1537_vm10, %v4776_v4 }
 0x529   : > { %3266 = vmatpush3.bf16.msra.mxu1 %v3263_v60 }
 0x52a   : > { %3275 = vmatprep.subr.bf16.mxu1 %v3813_v25 }
 0x5cf   : > { %v3014_v40 = vpop.f32.mrb[22].mxu1 }
 0x5d0   : > { %v1764_v19 = vpop.f32.mrb[23].mxu1  ;;  %v1770_v28 = vadd.f32 %v3014_v40, %v2639_v43 }
 0x5d1   : > { %v1765_v23 = vadd.f32 %v2639_v43, %v1764_v19 }
 0x5d3   : > { %v3017_v32 = vpop.f32.mrb[24].mxu1  ;;  %3064 = vmatprep.mubr.f32.mxu0 %v1765_v23 }
 0x5d4   : > { %v1774_v37 = vpop.f32.mrb[25].mxu1  ;;  %v1780_v61 = vadd.f32 %v3017_v32, %v2639_v43 }
 0x5d5   : > { %v1775_v39 = vadd.f32 %v2639_v43, %v1774_v37 }
 0x5ef   : > { %v3052_v2 = vpop.f32.mrb[26].mxu1 }
 0x5f0   : > { %v1878_v24 = vadd.f32 %v3052_v2, %v2640_v55  ;;  %v1872_v4 = vpop.f32.mrb[27].mxu1 }
 0x5f1   : > { %v1873_v35 = vadd.f32 %v2640_v55, %v1872_v4 }
 0x5f3   : > { %v3251_v51 = vpack.c.bf16 %v1878_v24, %v1873_v35  ;;  %v3055_v6 = vpop.f32.mrb[28].mxu1 }
 0x5f4   : > { %v1888_v49 = vadd.f32 %v3055_v6, %v2640_v55  ;;  %v1882_v12 = vpop.f32.mrb[29].mxu1 }
 0x5f5   : > { %v1883_v3 = vadd.f32 %v2640_v55, %v1882_v12  ;;  %3252 = vmatprep.subr.bf16.mxu0 %v3251_v51 }
 0x5f6   : > { %3254 = vmatpush3.bf16.xpose.msra.mxu0 %v3251_v51 }
 0x5f7   : > { %v3255_v15 = vpack.c.bf16 %v1888_v49, %v1883_v3  ;;  %v3074_v21 = vpop.f32.mrb[30].mxu1 }
 0x5f8   : > { %v2046_v46 = vpop.f32.mrb[31].mxu1  ;;  %vm2199_vm3 = vcmp.eq.f32.partialorder %v3074_v21, 0.0 }
 0x5f9   : > { %3256 = vmatprep.subr.bf16.mxu0 %v3255_v15  ;;  %3086 = vmatprep.mubr.msk.f32.mxu1 %vm1463_vm4, %v2046_v46  ;;  %vm2198_vm9 = vcmp.eq.f32.partialorder %v2046_v46, 0.0 }
 0x5fa   : > { %3087 = vmatmul.mubr.msk.f32.vlgmr.msra.gmra.mrb[34].mxu1 %vm1463_vm4, %v3074_v21 }
 0x5fb   : > { %v3077_v13 = vpop.f32.mrb[32].mxu1 }
 0x5fc   : > { %v2056_v17 = vpop.f32.mrb[33].mxu1  ;;  %vm2201_vm12 = vcmp.eq.f32.partialorder %v3077_v13, 0.0 }
 0x5fd   : > { %3089 = vmatprep.mubr.msk.f32.mxu1 %vm1463_vm4, %v2056_v17  ;;  %vm2200_vm14 = vcmp.eq.f32.partialorder %v2056_v17, 0.0 }
 0x5fe   : > { %3258 = vmatpush3.bf16.xpose.msra.mxu0 %v3255_v15  ;;  %3090 = vmatmul.mubr.msk.f32.gmra.mrb[36].mxu1 %vm1463_vm4, %v3077_v13 }
 0x5ff   : > { %3268 = vmatprep.subr.bf16.mxu0 %v4787_v27  ;;  %3114 = vmatprep.mubr.msk.f32.mxu1 %vm3814_vm0, %v3812_v50 }
 0x605   : > { %3065 = vmatmul.mubr.f32.vlgmr.msra.gmra.mrb[64].mxu0 %v1770_v28 }
 0x606   : > { %3067 = vmatprep.mubr.f32.mxu0 %v1775_v39  ;;  %3270 = vmatpush3.bf16.msra.mxu0 %v4787_v27 }
 0x607   : > { %3272 = vmatprep.subr.bf16.mxu0 %v4795_v36 }
 0x609   : > { %3068 = vmatmul.mubr.f32.gmra.mrb[66].mxu0 %v1780_v61 }
 0x60a   : > { %3274 = vmatpush3.bf16.msra.mxu0 %v4795_v36 }
 0x6cd   : > { %v3088_v34 = vpop.f32.mrb[34].mxu1 }
 0x6ce   : > { %v2171_v44 = vpop.f32.mrb[35].mxu1  ;;  %vm2191_vm0 = vcmp.eq.f32.partialorder %v3088_v34, 0.0 }
 0x6cf   : > { %vm2190_vm10 = vcmp.eq.f32.partialorder %v2171_v44, 0.0 }
 0x6d1   : > { %v3091_v29 = vpop.f32.mrb[36].mxu1 }
 0x6d2   : > { %v2181_v18 = vpop.f32.mrb[37].mxu1  ;;  %vm2193_vm11 = vcmp.eq.f32.partialorder %v3091_v29, 0.0 }
 0x6d3   : > { %vm2192_vm13 = vcmp.eq.f32.partialorder %v2181_v18, 0.0 }
 0x6d8   : > { %v3066_v30 = vpop.f32.mrb[64].mxu0 }
 0x6d9   : > { %v1977_v33 = vmul.f32 0.088388346, %v3066_v30  ;;  %v1957_v11 = vpop.f32.mrb[65].mxu0 }
 0x6da   : > { %v1976_v50 = vmul.f32 0.088388346, %v1957_v11 }
 0x6db   : > { %v2195_v5 = vsel %vm2191_vm0, -9e+15, %v1977_v33 }
 0x6dc   : > { %v2194_v27 = vsel %vm2190_vm10, -9e+15, %v1976_v50  ;;  %v3069_v31 = vpop.f32.mrb[66].mxu0  ;;  %v2203_v59 = vsel %vm2199_vm3, -3e+38, %v2195_v5 }
 0x6dd   : > { %v1979_v26 = vmul.f32 0.088388346, %v3069_v31  ;;  %v1967_v52 = vpop.f32.mrb[67].mxu0  ;;  %v2209_v36 = vsel %vm1463_vm4, %v2203_v59, -inf  ;;  %v2202_v38 = vsel %vm2198_vm9, -3e+38, %v2194_v27 }
 0x6de   : > { %v1978_v63 = vmul.f32 0.088388346, %v1967_v52  ;;  %2210 = vmax.xlane.f32.xlu1 %v2209_v36  ;;  %v2206_v10 = vsel %vm1463_vm4, %v2202_v38, -inf }
 0x6df   : > { %v2197_v9 = vsel %vm2193_vm11, -9e+15, %v1979_v26  ;;  %2207 = vmax.xlane.f32.xlu0 %v2206_v10 }
 0x6e0   : > { %v2196_v62 = vsel %vm2192_vm13, -9e+15, %v1978_v63  ;;  %v2205_v54 = vsel %vm2201_vm12, -3e+38, %v2197_v9 }
 0x6e1   : > { %v2215_v58 = vsel %vm1463_vm4, %v2205_v54, -inf  ;;  %v2204_v16 = vsel %vm2200_vm14, -3e+38, %v2196_v62 }
 0x6e2   : > { %2216 = vmax.xlane.f32.xlu1 %v2215_v58  ;;  %v2212_v1 = vsel %vm1463_vm4, %v2204_v16, -inf }
 0x6e3   : > { %2213 = vmax.xlane.f32.xlu0 %v2212_v1 }
 0x76b   : > { %v2211_v48 = vpop.xlane.xlu1 %2210 }
 0x76c   : > { %v2219_v47 = vsub.f32 %v2203_v59, %v2211_v48  ;;  %v2208_v22 = vpop.xlane.xlu0 %2207 }
 0x76d   : > { %v2218_v41 = vsub.f32 %v2202_v38, %v2208_v22 }
 0x76e   : > { %v2224_v14 = vmul.f32 1.442695, %v2219_v47 }
 0x76f   : > { %v2222_v53 = vmul.f32 1.442695, %v2218_v41  ;;  %v2217_v45 = vpop.xlane.xlu1 %2216 }
 0x770   : > { %3563 = vpow2.f32 %v2224_v14  ;;  %v2221_v8 = vsub.f32 %v2205_v54, %v2217_v45  ;;  %v2214_v20 = vpop.xlane.xlu0 %2213 }
 0x771   : > { %3565 = vpow2.f32 %v2222_v53  ;;  %v2220_v56 = vsub.f32 %v2204_v16, %v2214_v20 }
 0x772   : > { %v2228_v0 = vmul.f32 1.442695, %v2221_v8 }
 0x773   : > { %v2226_v42 = vmul.f32 1.442695, %v2220_v56 }
 0x774   : > { %3567 = vpow2.f32 %v2228_v0 }
 0x775   : > { %3569 = vpow2.f32 %v2226_v42 }
 0x77a   : > { %v3564_v7 = vpop.eup %3563 }
 0x77b   : > { %v3566_v60 = vpop.eup %3565  ;;  %v2233_v43 = vsel %vm1463_vm4, %v3564_v7, 0.0 }
 0x77c   : > { %2234 = vadd.xlane.f32.xlu1 %v2233_v43  ;;  %v2230_v40 = vsel %vm1463_vm4, %v3566_v60, 0.0 }
 0x77d   : > { %2231 = vadd.xlane.f32.xlu0 %v2230_v40 }
 0x77e   : > { %v3568_v19 = vpop.eup %3567 }
 0x77f   : > { %v3570_v23 = vpop.eup %3569  ;;  %v2239_v32 = vsel %vm1463_vm4, %v3568_v19, 0.0 }
 0x780   : > { %2240 = vadd.xlane.f32.xlu1 %v2239_v32  ;;  %v2236_v37 = vsel %vm1463_vm4, %v3570_v23, 0.0 }
 0x781   : > { %2237 = vadd.xlane.f32.xlu0 %v2236_v37 }
 0x809   : > { %v2235_v55 = vpop.xlane.xlu1 %2234 }
 0x80a   : > { %3571 = vrcp.f32 %v2235_v55  ;;  %v2232_v2 = vpop.xlane.xlu0 %2231 }
 0x80b   : > { %3573 = vrcp.f32 %v2232_v2 }
 0x80d   : > { %v2241_v24 = vpop.xlane.xlu1 %2240 }
 0x80e   : > { %3575 = vrcp.f32 %v2241_v24  ;;  %v2238_v4 = vpop.xlane.xlu0 %2237 }
 0x80f   : > { %3577 = vrcp.f32 %v2238_v4 }
 0x814   : > { %v3572_v35 = vpop.eup %3571 }
 0x815   : > { %v3574_v51 = vpop.eup %3573  ;;  %v2245_v49 = vmul.f32 %v3572_v35, %v3564_v7 }
 0x816   : > { %v2243_v6 = vmul.f32 %v3574_v51, %v3566_v60 }
 0x818   : > { %v3576_v12 = vpop.eup %3575  ;;  %3100 = vmatprep.mubr.msk.f32.mxu0 %vm1463_vm4, %v2243_v6 }
 0x819   : > { %v3578_v3 = vpop.eup %3577  ;;  %3101 = vmatmul.mubr.msk.f32.vlgmr.msra.gmra.mrb[68].mxu0 %vm1463_vm4, %v2245_v49  ;;  %v2249_v21 = vmul.f32 %v3576_v12, %v3568_v19 }
 0x81a   : > { %v2247_v15 = vmul.f32 %v3578_v3, %v3570_v23 }
 0x81c   : > { %3103 = vmatprep.mubr.msk.f32.mxu0 %vm1463_vm4, %v2247_v15 }
 0x81d   : > { %3104 = vmatmul.mubr.msk.f32.gmra.mrb[70].mxu0 %vm1463_vm4, %v2249_v21 }
 0x8ec   : > { %v3102_v46 = vpop.f32.mrb[68].mxu0 }
 0x8ed   : > { %v2328_v13 = vpop.f32.mrb[69].mxu0 }
 0x8ee   : > { %v3276_v17 = vpack.c.bf16 %v3102_v46, %v2328_v13 }
 0x8f0   : > { %v3105_v28 = vpop.f32.mrb[70].mxu0  ;;  %3277 = vmatpush3.bf16.msra.mxu1 %v3276_v17 }
 0x8f1   : > { %v2338_v39 = vpop.f32.mrb[71].mxu0  ;;  %3278 = vmatprep.subr.bf16.mxu1 %v3813_v25 }
 0x8f2   : > { %v3279_v61 = vpack.c.bf16 %v3105_v28, %v2338_v39 }
 0x8f4   : > { %3280 = vmatpush3.bf16.msra.mxu1 %v3279_v61 }
 0x8f7   : > { %3115 = vmatmul.mubr.msk.f32.vlgmr.msra.gmra.mrb[38].mxu1 %vm1463_vm4, %v4746_v57 }
 0x9ca   : > { %v2413_v25 = vpop.f32.mrb[38].mxu1 }
 0x9cb   : > { %2417 = vst [vmem:[%s404_s0] sm:$0xff] %v2413_v25  ;;  %v3116_v34 = vpop.f32.mrb[39].mxu1 }
 0x9cc   : > { %3736 = shalt.err (!%p3733_p10)
}
 0x9cd   : > { %s3737_s5 = scalar_lea.hbm %s4871_s26, 128  ;;  %s3741_s2 = scalar_lea.hbm %s4921_s8, 256 }
 0x9ce   : > { %p3738_p13 = scmp.ne.s32.totalorder %s4871_s26, %s3737_s5  ;;  %p3742_p9 = scmp.lt.u32.totalorder %s4871_s26, %s4921_s8 }
 0x9cf   : > { %p3743_p3 = scmp.lt.u32.totalorder %s3741_s2, %s3737_s5  ;;  %p3745_p12 = scmp.lt.u32.totalorder %s3737_s5, %s4871_s26 }
 0x9d0   : > { %p3739_p5 = pnand %p3738_p13, %p4979_p1 }
 0x9d1   : > { %p3744_p7 = por %p3743_p3, %p3742_p9 }
 0x9d2   : > { %p3740_p11 = pneg %p3739_p5 }
 0x9d3   : > { %p3746_p2 = por %p3745_p12, %p3744_p7 }
 0x9d5   : > { %p3747_p4 = pnand %p3746_p2, %p3740_p11 }
 0x9d7   : > { %3750 = shalt.err (!%p3747_p4)
}
 0x9d8   : > { %3297 = dma.vmem_to_hbm [thread:$0]  (%p4979_p1), %s4866_s19, 128, %s4871_s26, %s2419_s27  }
 0x9d9 PF: > { %s4980_s10 = sld [smem:[#allocation17_spill]]  ;;  %s4981_s14 = sld [smem:[#allocation18_spill]] }
 0x9da   : > { %p4983_p8 = scmp.ge.s32.totalorder %s3801_s30, 2 }
 0x9df   : > { %s2444_s17 = sand.u32 1, %s4980_s10   ;;  %p4982_p0 = scmp.ne.s32.totalorder %s4981_s14, 0 }
 0x9e0   : > { %s2445_s0 = scalar_lea.sflag [#allocation4], %s2444_s17 }
 0x9e1   : > { %p3317_p6 = pnand %p4983_p8, %p4982_p0 }
 0x9e3   : > { %3784 = dma.done.wait (!%p3317_p6), %s2445_s0, 128  }
 0x9e4   : > { %3786 = vsyncadd (!%p3317_p6), %s2445_s0, 4294967168  ;;  %p25_p10 = scmp.ge.s32.totalorder %s3975_s25, 4   ;;  %s4984_s27 = smov %s3793_s28 }
 0x9e5   : > { %s4985_s28 = smov %s3797_s29  ;;  %s4986_s29 = smov %s4003_s16 }
 0x9e6   : > { %s4987_s30 = smov %s3975_s25  ;;  %27 = sbr.rel (!%p25_p10) target bundleno = 13 (0xd), region = 122 }
 0x9ed   :  { %2450 = vsyncpa [#allocation3], 1 }
 0x9ee   :  { %2452 = vsyncpa [#allocation3 + $0x1], 1 }
 0x9ef   :  { %2453 = vsyncpa [#allocation6], 1 }
 0x9f0   :  { %2455 = vsyncpa [#allocation6 + $0x1], 1 }
 0x9f1   :  { %2456 = vsyncpa [#allocation9], 1 }
 0x9f2   :  { %2457 = vsyncpa [#allocation4], 1 }
 0x9f3   :  { %2459 = vsyncpa [#allocation4 + $0x1], 1 }

</bundles_post_ra>
